<compile_context>
chip_gen: v7x
topology: tpu7x:2x2x1
jax: 0.10.0
libtpu: 0.0.40
codegen_flags: <defaults>
</compile_context>

<pallas_src>
import math

import jax
import jax.numpy as jnp
from jax.experimental import pallas as pl
from jax.experimental.pallas import tpu as pltpu


def _round_up(x, m):
    return (x + m - 1) // m * m


def _leaky_relu(x, slope=0.2):
    return jnp.where(x > 0, x, slope * x)


def generator_kernel(z_ref,
                     w1_ref, b1_ref,
                     w2_ref, b2_ref,
                     w3_ref, b3_ref,
                     w4_ref, b4_ref,
                     w5_ref, b5_ref,
                     out_ref,
                     h4_ref):
    """Fused 5-layer MLP.

    Grid = (batch tiles i, output-column tiles j).  Layers 1-4 are computed
    once per batch tile (j == 0) and cached in `h4_ref` (bf16 VMEM scratch);
    every j-step then performs one (TILE_B, 1024) x (1024, TILE_N) matmul,
    bias add, and tanh.
    """

    @pl.when(pl.program_id(1) == 0)
    def _():
        h = z_ref[...]  # bf16 (TILE_B, K_PAD)
        for w_ref, b_ref in ((w1_ref, b1_ref), (w2_ref, b2_ref),
                             (w3_ref, b3_ref), (w4_ref, b4_ref)):
            a = jnp.dot(h, w_ref[...], preferred_element_type=jnp.float32)
            a = _leaky_relu(a + b_ref[...])          # f32 bias + activation
            h = a.astype(jnp.bfloat16)               # bf16 feed for next MXU pass
        h4_ref[...] = h

    o = jnp.dot(h4_ref[...], w5_ref[...], preferred_element_type=jnp.float32)
    out_ref[...] = jnp.tanh(o + b5_ref[...]).astype(out_ref.dtype)


def generator_forward(z, params, img_shape):
    """z: (B, latent_dim) float32 -> img: (B, C, H, W) float32 (NCHW)."""
    B, latent_dim = z.shape
    out_feat = int(math.prod(img_shape))

    (w1, b1), (w2, b2), (w3, b3), (w4, b4), (w5, b5) = params

    # ---- padding / tiling decisions --------------------------------------
    K_PAD = _round_up(latent_dim, 128)            # full MXU contraction depth
    out_pad = _round_up(out_feat, 128)            # lane-dense output stores
    TILE_B = 256 if B >= 256 else _round_up(B, 16)
    B_pad = _round_up(B, TILE_B)
    if out_pad % 512 == 0:
        TILE_N = 512
    elif out_pad % 256 == 0:
        TILE_N = 256
    else:
        TILE_N = 128
    nb = B_pad // TILE_B
    nn = out_pad // TILE_N

    # ---- padded, bf16 operands -------------------------------------------
    z_p = jnp.zeros((B_pad, K_PAD), jnp.bfloat16)
    z_p = z_p.at[:B, :latent_dim].set(z.astype(jnp.bfloat16))

    w1_p = jnp.zeros((K_PAD, 128), jnp.bfloat16).at[:latent_dim, :].set(
        w1.astype(jnp.bfloat16))
    w2_p = w2.astype(jnp.bfloat16)
    w3_p = w3.astype(jnp.bfloat16)
    w4_p = w4.astype(jnp.bfloat16)
    w5_p = jnp.zeros((1024, out_pad), jnp.bfloat16).at[:, :out_feat].set(
        w5.astype(jnp.bfloat16))
    b5_p = jnp.zeros((1, out_pad), jnp.float32).at[:, :out_feat].set(b5)

    # ---- specs ------------------------------------------------------------
    const = lambda i, j: (0, 0)
    in_specs = [
        pl.BlockSpec((TILE_B, K_PAD), lambda i, j: (i, 0)),        # z tile
        pl.BlockSpec(w1_p.shape, const), pl.BlockSpec(b1.shape, const),
        pl.BlockSpec(w2_p.shape, const), pl.BlockSpec(b2.shape, const),
        pl.BlockSpec(w3_p.shape, const), pl.BlockSpec(b3.shape, const),
        pl.BlockSpec(w4_p.shape, const), pl.BlockSpec(b4.shape, const),
        pl.BlockSpec((1024, TILE_N), lambda i, j: (0, j)),         # W5 cols
        pl.BlockSpec((1, TILE_N), lambda i, j: (0, j)),            # b5 cols
    ]
    out_specs = pl.BlockSpec((TILE_B, TILE_N), lambda i, j: (i, j))

    # ---- VMEM budget (generation-aware cap: <= 40 MiB, safe on v7x) -------
    nbytes = lambda a: a.size * a.dtype.itemsize
    vmem_need = (
        2 * TILE_B * K_PAD * 2                                     # z tile x2 bufs
        + 2 * sum(nbytes(a) for a in
                  (w1_p, b1, w2_p, b2, w3_p, b3, w4_p, b4))        # resident weights x2
        + 2 * (1024 * TILE_N * 2 + TILE_N * 4)                     # W5/b5 tiles x2
        + 2 * TILE_B * TILE_N * 4                                  # out tile x2
        + TILE_B * 1024 * 2                                        # h4 scratch
        + TILE_B * 1024 * 4 * 2                                    # activation temps
    )
    vmem_limit = int(min(max(vmem_need * 3 // 2, 32 << 20), 40 << 20))

    # ---- cost estimate (scheduling hint) -----------------------------------
    flops = 2 * B_pad * (K_PAD * 128 + 128 * 256 + 256 * 512
                         + 512 * 1024 + 1024 * out_pad)
    bytes_accessed = (nbytes(z_p) + B_pad * out_pad * 4
                      + sum(nbytes(a) for a in
                            (w1_p, b1, w2_p, b2, w3_p, b3, w4_p, b4, w5_p, b5_p)))
    cost = pl.CostEstimate(flops=flops,
                           transcendentals=B_pad * out_pad,
                           bytes_accessed=bytes_accessed)

    out = pl.pallas_call(
        generator_kernel,
        out_shape=jax.ShapeDtypeStruct((B_pad, out_pad), jnp.float32),
        grid_spec=pltpu.PrefetchScalarGridSpec(
            num_scalar_prefetch=0,
            grid=(nb, nn),
            in_specs=in_specs,
            out_specs=out_specs,
            scratch_shapes=[pltpu.VMEM((TILE_B, 1024), jnp.bfloat16)],
        ),
        compiler_params=pltpu.CompilerParams(
            dimension_semantics=("parallel", "arbitrary"),
            vmem_limit_bytes=vmem_limit,
        ),
        cost_estimate=cost,
    )(z_p, w1_p, b1, w2_p, b2, w3_p, b3, w4_p, b4, w5_p, b5_p)

    return out[:B, :out_feat].reshape(B, *img_shape)


def init_params(key, latent_dim, img_shape):
    """Deterministic init mirroring PyTorch nn.Linear default (U[-1/sqrt(in), 1/sqrt(in)])."""
    sizes = [latent_dim, 128, 256, 512, 1024, int(math.prod(img_shape))]
    params = []
    for i in range(len(sizes) - 1):
        fan_in, fan_out = sizes[i], sizes[i + 1]
        key, kw, kb = jax.random.split(key, 3)
        bound = 1.0 / math.sqrt(fan_in)
        # Stored as (in, out) so the kernel computes x @ W + b
        # (equivalent to PyTorch's x @ W.T with W of shape (out, in)).
        w = jax.random.uniform(kw, (fan_in, fan_out), jnp.float32, -bound, bound)
        b = jax.random.uniform(kb, (1, fan_out), jnp.float32, -bound, bound)
        params.append((w, b))
    return params


def _reference_forward(z, params):
    """Pure-JAX reference (bf16-rounded weights, f32 math)."""
    h = z
    n = len(params)
    for idx, (w, b) in enumerate(params):
        w32 = w.astype(jnp.bfloat16).astype(jnp.float32)
        h = h @ w32 + b
        h = jnp.tanh(h) if idx == n - 1 else jnp.where(h > 0, h, 0.2 * h)
    return h


if __name__ == "__main__":
    # Small, module-consistent shapes: latent_dim=32, img_shape=(1, 8, 8), batch=2.
    latent_dim = 32
    img_shape = (1, 8, 8)
    batch = 2

    key = jax.random.PRNGKey(0)
    key, kz = jax.random.split(key)
    z = jax.random.normal(kz, (batch, latent_dim), dtype=jnp.float32)

    params = init_params(key, latent_dim, img_shape)

    img = generator_forward(z, params, img_shape)
    img = jax.block_until_ready(img)

    assert img.shape == (batch, *img_shape), img.shape
    assert img.dtype == jnp.float32
    # tanh output range sanity check
    assert bool(jnp.all(jnp.abs(img) <= 1.0))

    # Numerical check vs. f32 reference (loose tol for bf16 activation casts).
    ref = _reference_forward(z, params).reshape(batch, *img_shape)
    max_err = float(jnp.max(jnp.abs(img - ref)))
    assert max_err < 6e-2, f"max abs error {max_err}"

    print("KERNEL_OK")
</pallas_src>

<mosaic_0001>
module attributes {stable_mosaic.version = 11 : i64} {
  func.func @generator_kernel(%arg0: i32, %arg1: i32, %arg2: memref<16x128xbf16, #tpu.memory_space<vmem>>, %arg3: memref<128x128xbf16, #tpu.memory_space<vmem>>, %arg4: memref<1x128xf32, #tpu.memory_space<vmem>>, %arg5: memref<128x256xbf16, #tpu.memory_space<vmem>>, %arg6: memref<1x256xf32, #tpu.memory_space<vmem>>, %arg7: memref<256x512xbf16, #tpu.memory_space<vmem>>, %arg8: memref<1x512xf32, #tpu.memory_space<vmem>>, %arg9: memref<512x1024xbf16, #tpu.memory_space<vmem>>, %arg10: memref<1x1024xf32, #tpu.memory_space<vmem>>, %arg11: memref<1024x128xbf16, #tpu.memory_space<vmem>>, %arg12: memref<1x128xf32, #tpu.memory_space<vmem>>, %arg13: memref<16x128xf32, #tpu.memory_space<vmem>>, %arg14: memref<16x1024xbf16, #tpu.memory_space<vmem>>) attributes {dimension_semantics = [#tpu.dimension_semantics<parallel>, #tpu.dimension_semantics<arbitrary>], iteration_bounds = array<i64: 1, 1>, scalar_prefetch = 0 : i64, scratch_operands = 1 : i64, tpu.core_type = #tpu.core_type<tc>, window_params = [{transform_indices = @transform_0, window_bounds = array<i64: 16, 128>}, {pipeline_mode = #tpu.pipeline_mode<synchronous>, transform_indices = @transform_1, window_bounds = array<i64: 128, 128>}, {pipeline_mode = #tpu.pipeline_mode<synchronous>, transform_indices = @transform_2, window_bounds = array<i64: 1, 128>}, {pipeline_mode = #tpu.pipeline_mode<synchronous>, transform_indices = @transform_3, window_bounds = array<i64: 128, 256>}, {pipeline_mode = #tpu.pipeline_mode<synchronous>, transform_indices = @transform_4, window_bounds = array<i64: 1, 256>}, {pipeline_mode = #tpu.pipeline_mode<synchronous>, transform_indices = @transform_5, window_bounds = array<i64: 256, 512>}, {pipeline_mode = #tpu.pipeline_mode<synchronous>, transform_indices = @transform_6, window_bounds = array<i64: 1, 512>}, {pipeline_mode = #tpu.pipeline_mode<synchronous>, transform_indices = @transform_7, window_bounds = array<i64: 512, 1024>}, {pipeline_mode = #tpu.pipeline_mode<synchronous>, transform_indices = @transform_8, window_bounds = array<i64: 1, 1024>}, {transform_indices = @transform_9, window_bounds = array<i64: 1024, 128>}, {transform_indices = @transform_10, window_bounds = array<i64: 1, 128>}, {transform_indices = @transform_11, window_bounds = array<i64: 16, 128>}]} {
    %c0_i32 = arith.constant 0 : i32
    %0 = arith.cmpi eq, %arg1, %c0_i32 : i32
    %1 = arith.extui %0 : i1 to i32
    %c0_i32_0 = arith.constant 0 : i32
    %2 = arith.cmpi ne, %1, %c0_i32_0 : i32
    scf.if %2 {
      %c0_8 = arith.constant 0 : index
      %c0_9 = arith.constant 0 : index
      %11 = vector.load %arg2[%c0_8, %c0_9] : memref<16x128xbf16, #tpu.memory_space<vmem>>, vector<16x128xbf16>
      %c0_10 = arith.constant 0 : index
      %c0_11 = arith.constant 0 : index
      %12 = vector.load %arg3[%c0_10, %c0_11] : memref<128x128xbf16, #tpu.memory_space<vmem>>, vector<128x128xbf16>
      %cst_12 = arith.constant dense<0.000000e+00> : vector<16x128xf32>
      %13 = tpu.matmul %11, %12, %cst_12 {dimension_numbers = #tpu.dot_dimension_numbers<[1], [0], [0], [1], [0, 0, 1, 1], [], []>} : vector<16x128xbf16>, vector<128x128xbf16>, vector<16x128xf32> -> vector<16x128xf32>
      %c0_13 = arith.constant 0 : index
      %c0_14 = arith.constant 0 : index
      %14 = vector.load %arg4[%c0_13, %c0_14] : memref<1x128xf32, #tpu.memory_space<vmem>>, vector<1x128xf32>
      %15 = vector.broadcast %14 : vector<1x128xf32> to vector<16x128xf32>
      %16 = arith.addf %13, %15 : vector<16x128xf32>
      %cst_15 = arith.constant 0.000000e+00 : f32
      %17 = vector.broadcast %cst_15 : f32 to vector<16x128xf32>
      %18 = arith.cmpf ogt, %16, %17 : vector<16x128xf32>
      %cst_16 = arith.constant 2.000000e-01 : f32
      %19 = vector.broadcast %cst_16 : f32 to vector<16x128xf32>
      %20 = arith.mulf %19, %16 : vector<16x128xf32>
      %21 = arith.select %18, %16, %20 : vector<16x128xi1>, vector<16x128xf32>
      %22 = arith.truncf %21 : vector<16x128xf32> to vector<16x128xbf16>
      %c0_17 = arith.constant 0 : index
      %c0_18 = arith.constant 0 : index
      %23 = vector.load %arg5[%c0_17, %c0_18] : memref<128x256xbf16, #tpu.memory_space<vmem>>, vector<128x256xbf16>
      %cst_19 = arith.constant dense<0.000000e+00> : vector<16x256xf32>
      %24 = tpu.matmul %22, %23, %cst_19 {dimension_numbers = #tpu.dot_dimension_numbers<[1], [0], [0], [1], [0, 0, 1, 1], [], []>} : vector<16x128xbf16>, vector<128x256xbf16>, vector<16x256xf32> -> vector<16x256xf32>
      %c0_20 = arith.constant 0 : index
      %c0_21 = arith.constant 0 : index
      %25 = vector.load %arg6[%c0_20, %c0_21] : memref<1x256xf32, #tpu.memory_space<vmem>>, vector<1x256xf32>
      %26 = vector.broadcast %25 : vector<1x256xf32> to vector<16x256xf32>
      %27 = arith.addf %24, %26 : vector<16x256xf32>
      %cst_22 = arith.constant 0.000000e+00 : f32
      %28 = vector.broadcast %cst_22 : f32 to vector<16x256xf32>
      %29 = arith.cmpf ogt, %27, %28 : vector<16x256xf32>
      %cst_23 = arith.constant 2.000000e-01 : f32
      %30 = vector.broadcast %cst_23 : f32 to vector<16x256xf32>
      %31 = arith.mulf %30, %27 : vector<16x256xf32>
      %32 = arith.select %29, %27, %31 : vector<16x256xi1>, vector<16x256xf32>
      %33 = arith.truncf %32 : vector<16x256xf32> to vector<16x256xbf16>
      %c0_24 = arith.constant 0 : index
      %c0_25 = arith.constant 0 : index
      %34 = vector.load %arg7[%c0_24, %c0_25] : memref<256x512xbf16, #tpu.memory_space<vmem>>, vector<256x512xbf16>
      %cst_26 = arith.constant dense<0.000000e+00> : vector<16x512xf32>
      %35 = tpu.matmul %33, %34, %cst_26 {dimension_numbers = #tpu.dot_dimension_numbers<[1], [0], [0], [1], [0, 0, 1, 1], [], []>} : vector<16x256xbf16>, vector<256x512xbf16>, vector<16x512xf32> -> vector<16x512xf32>
      %c0_27 = arith.constant 0 : index
      %c0_28 = arith.constant 0 : index
      %36 = vector.load %arg8[%c0_27, %c0_28] : memref<1x512xf32, #tpu.memory_space<vmem>>, vector<1x512xf32>
      %37 = vector.broadcast %36 : vector<1x512xf32> to vector<16x512xf32>
      %38 = arith.addf %35, %37 : vector<16x512xf32>
      %cst_29 = arith.constant 0.000000e+00 : f32
      %39 = vector.broadcast %cst_29 : f32 to vector<16x512xf32>
      %40 = arith.cmpf ogt, %38, %39 : vector<16x512xf32>
      %cst_30 = arith.constant 2.000000e-01 : f32
      %41 = vector.broadcast %cst_30 : f32 to vector<16x512xf32>
      %42 = arith.mulf %41, %38 : vector<16x512xf32>
      %43 = arith.select %40, %38, %42 : vector<16x512xi1>, vector<16x512xf32>
      %44 = arith.truncf %43 : vector<16x512xf32> to vector<16x512xbf16>
      %c0_31 = arith.constant 0 : index
      %c0_32 = arith.constant 0 : index
      %45 = vector.load %arg9[%c0_31, %c0_32] : memref<512x1024xbf16, #tpu.memory_space<vmem>>, vector<512x1024xbf16>
      %cst_33 = arith.constant dense<0.000000e+00> : vector<16x1024xf32>
      %46 = tpu.matmul %44, %45, %cst_33 {dimension_numbers = #tpu.dot_dimension_numbers<[1], [0], [0], [1], [0, 0, 1, 1], [], []>} : vector<16x512xbf16>, vector<512x1024xbf16>, vector<16x1024xf32> -> vector<16x1024xf32>
      %c0_34 = arith.constant 0 : index
      %c0_35 = arith.constant 0 : index
      %47 = vector.load %arg10[%c0_34, %c0_35] : memref<1x1024xf32, #tpu.memory_space<vmem>>, vector<1x1024xf32>
      %48 = vector.broadcast %47 : vector<1x1024xf32> to vector<16x1024xf32>
      %49 = arith.addf %46, %48 : vector<16x1024xf32>
      %cst_36 = arith.constant 0.000000e+00 : f32
      %50 = vector.broadcast %cst_36 : f32 to vector<16x1024xf32>
      %51 = arith.cmpf ogt, %49, %50 : vector<16x1024xf32>
      %cst_37 = arith.constant 2.000000e-01 : f32
      %52 = vector.broadcast %cst_37 : f32 to vector<16x1024xf32>
      %53 = arith.mulf %52, %49 : vector<16x1024xf32>
      %54 = arith.select %51, %49, %53 : vector<16x1024xi1>, vector<16x1024xf32>
      %55 = arith.truncf %54 : vector<16x1024xf32> to vector<16x1024xbf16>
      %c0_38 = arith.constant 0 : index
      %c0_39 = arith.constant 0 : index
      %56 = vector.load %arg14[%c0_38, %c0_39] : memref<16x1024xbf16, #tpu.memory_space<vmem>>, vector<16x1024xbf16>
      tpu.vector_store %arg14[%c0_38, %c0_39], %55 {strides = array<i32>} : memref<16x1024xbf16, #tpu.memory_space<vmem>>, vector<16x1024xbf16>,
    } else {
    }
    %c0 = arith.constant 0 : index
    %c0_1 = arith.constant 0 : index
    %3 = vector.load %arg14[%c0, %c0_1] : memref<16x1024xbf16, #tpu.memory_space<vmem>>, vector<16x1024xbf16>
    %c0_2 = arith.constant 0 : index
    %c0_3 = arith.constant 0 : index
    %4 = vector.load %arg11[%c0_2, %c0_3] : memref<1024x128xbf16, #tpu.memory_space<vmem>>, vector<1024x128xbf16>
    %cst = arith.constant dense<0.000000e+00> : vector<16x128xf32>
    %5 = tpu.matmul %3, %4, %cst {dimension_numbers = #tpu.dot_dimension_numbers<[1], [0], [0], [1], [0, 0, 1, 1], [], []>} : vector<16x1024xbf16>, vector<1024x128xbf16>, vector<16x128xf32> -> vector<16x128xf32>
    %c0_4 = arith.constant 0 : index
    %c0_5 = arith.constant 0 : index
    %6 = vector.load %arg12[%c0_4, %c0_5] : memref<1x128xf32, #tpu.memory_space<vmem>>, vector<1x128xf32>
    %7 = vector.broadcast %6 : vector<1x128xf32> to vector<16x128xf32>
    %8 = arith.addf %5, %7 : vector<16x128xf32>
    %9 = math.tanh %8 : vector<16x128xf32>
    %c0_6 = arith.constant 0 : index
    %c0_7 = arith.constant 0 : index
    %10 = vector.load %arg13[%c0_6, %c0_7] : memref<16x128xf32, #tpu.memory_space<vmem>>, vector<16x128xf32>
    tpu.vector_store %arg13[%c0_6, %c0_7], %9 {strides = array<i32>} : memref<16x128xf32, #tpu.memory_space<vmem>>, vector<16x128xf32>,
    return
  }
  func.func @transform_0(%arg0: i32, %arg1: i32) -> (i32, i32) {
    %c0_i32 = arith.constant 0 : i32
    %c0_i32_0 = arith.constant 0 : i32
    return %arg0, %c0_i32 : i32, i32
  }
  func.func @transform_1(%arg0: i32, %arg1: i32) -> (i32, i32) {
    %c0_i32 = arith.constant 0 : i32
    %c0_i32_0 = arith.constant 0 : i32
    %c0_i32_1 = arith.constant 0 : i32
    return %c0_i32, %c0_i32_0 : i32, i32
  }
  func.func @transform_2(%arg0: i32, %arg1: i32) -> (i32, i32) {
    %c0_i32 = arith.constant 0 : i32
    %c0_i32_0 = arith.constant 0 : i32
    %c0_i32_1 = arith.constant 0 : i32
    return %c0_i32, %c0_i32_0 : i32, i32
  }
  func.func @transform_3(%arg0: i32, %arg1: i32) -> (i32, i32) {
    %c0_i32 = arith.constant 0 : i32
    %c0_i32_0 = arith.constant 0 : i32
    %c0_i32_1 = arith.constant 0 : i32
    return %c0_i32, %c0_i32_0 : i32, i32
  }
  func.func @transform_4(%arg0: i32, %arg1: i32) -> (i32, i32) {
    %c0_i32 = arith.constant 0 : i32
    %c0_i32_0 = arith.constant 0 : i32
    %c0_i32_1 = arith.constant 0 : i32
    return %c0_i32, %c0_i32_0 : i32, i32
  }
  func.func @transform_5(%arg0: i32, %arg1: i32) -> (i32, i32) {
    %c0_i32 = arith.constant 0 : i32
    %c0_i32_0 = arith.constant 0 : i32
    %c0_i32_1 = arith.constant 0 : i32
    return %c0_i32, %c0_i32_0 : i32, i32
  }
  func.func @transform_6(%arg0: i32, %arg1: i32) -> (i32, i32) {
    %c0_i32 = arith.constant 0 : i32
    %c0_i32_0 = arith.constant 0 : i32
    %c0_i32_1 = arith.constant 0 : i32
    return %c0_i32, %c0_i32_0 : i32, i32
  }
  func.func @transform_7(%arg0: i32, %arg1: i32) -> (i32, i32) {
    %c0_i32 = arith.constant 0 : i32
    %c0_i32_0 = arith.constant 0 : i32
    %c0_i32_1 = arith.constant 0 : i32
    return %c0_i32, %c0_i32_0 : i32, i32
  }
  func.func @transform_8(%arg0: i32, %arg1: i32) -> (i32, i32) {
    %c0_i32 = arith.constant 0 : i32
    %c0_i32_0 = arith.constant 0 : i32
    %c0_i32_1 = arith.constant 0 : i32
    return %c0_i32, %c0_i32_0 : i32, i32
  }
  func.func @transform_9(%arg0: i32, %arg1: i32) -> (i32, i32) {
    %c0_i32 = arith.constant 0 : i32
    %c0_i32_0 = arith.constant 0 : i32
    return %c0_i32, %arg1 : i32, i32
  }
  func.func @transform_10(%arg0: i32, %arg1: i32) -> (i32, i32) {
    %c0_i32 = arith.constant 0 : i32
    %c0_i32_0 = arith.constant 0 : i32
    return %c0_i32, %arg1 : i32, i32
  }
  func.func @transform_11(%arg0: i32, %arg1: i32) -> (i32, i32) {
    %c0_i32 = arith.constant 0 : i32
    return %arg0, %arg1 : i32, i32
  }
}

</mosaic_0001>

<bundles_post_ra>
// kernel: tpu_custom_call.1
= control target key start
LH: loop header
LB: loop body
LE: loop exit
PB: predicated region body
PF: predicated region fallthrough
CT: control target
= control target key end

     0   :  { %16 = vsyncpa [#allocation4], 0  ;;  %s4875_s0 = inlined_call_operand.hbm [shape: bf16[16,128], index: 0, kind: input, shape index: {}]   ;;  %s4876_s1 = inlined_call_operand.hbm [shape: bf16[128,128], index: 1, kind: input, shape index: {}]   ;;  %s4877_s2 = inlined_call_operand.vmem [shape: f32[1,128], index: 2, kind: input, shape index: {}]   ;;  %s4878_s3 = inlined_call_operand.hbm [shape: bf16[128,256], index: 3, kind: input, shape index: {}]   ;;  %s4879_s4 = inlined_call_operand.vmem [shape: f32[1,256], index: 4, kind: input, shape index: {}]   ;;  %s4880_s5 = inlined_call_operand.hbm [shape: bf16[256,512], index: 5, kind: input, shape index: {}]   ;;  %s4881_s6 = inlined_call_operand.vmem [shape: f32[1,512], index: 6, kind: input, shape index: {}]   ;;  %s4882_s7 = inlined_call_operand.hbm [shape: bf16[512,1024], index: 7, kind: input, shape index: {}]   ;;  %s4883_s8 = inlined_call_operand.vmem [shape: f32[1,1024], index: 8, kind: input, shape index: {}]   ;;  %s4884_s9 = inlined_call_operand.hbm [shape: bf16[1024,128], index: 9, kind: input, shape index: {}]   ;;  %s4885_s10 = inlined_call_operand.vmem [shape: f32[1,128], index: 10, kind: input, shape index: {}]   ;;  %s4886_s11 = inlined_call_operand.hbm [shape: f32[16,128], index: 11, kind: output, shape index: {}]  }
   0x1   :  { %17 = vsyncpa [#allocation7], 0 }
   0x2   :  { %18 = vsyncpa [#allocation10], 0 }
   0x3   :  { %19 = vsyncpa [#allocation13], 0 }
   0x4   :  { %20 = vsyncpa [#allocation5], 0  ;;  %s4578_s17 = smov [#allocation6]   ;;  %s4579_s19 = smov [#allocation9]  }
   0x5   :  { %s38_s18 = sshll.u32 %s4578_s17, 4  ;;  %s66_s20 = sshll.u32 %s4579_s19, 4  ;;  %s39_s18 = int_to_ptr.vmem [resolvable:$true] %s38_s18  ;;  %s4656_s20 = int_to_ptr.vmem [resolvable:$true] %s66_s20 }
   0x6   :  { %s4414_s23 = scalar_lea.hbm %s4876_s1, 1024 }
   0x7   :  { %p4415_p0 = scmp.ne.s32.totalorder %s4876_s1, %s4414_s23  ;;  %p4418_p1 = scmp.lt.u32.totalorder %s4414_s23, %s4876_s1 }
   0x9   :  { %p4420_p2 = pnand %p4418_p1, %p4415_p0 }
   0xb   :  { %4423 = shalt.err (!%p4420_p2)
}
   0xc   :  { %s4424_s28 = scalar_lea.vmem %s39_s18, 1024  ;;  %p4429_p4 = scmp.lt.s32.totalorder %s39_s18, %s39_s18 }
   0xd   :  { %p4425_p3 = scmp.ne.s32.totalorder %s39_s18, %s4424_s28  ;;  %p4430_p5 = scmp.lt.s32.totalorder %s4424_s28, %s4424_s28 }
   0xf   :  { %p4431_p6 = por %p4430_p5, %p4429_p4 }
  0x11   :  { %p4432_p7 = pnand %p4431_p6, %p4425_p3 }
  0x13   :  { %4435 = shalt.err (!%p4432_p7)
}
  0x14   :  { %s4580_s29 = smov 64   ;;  %s4581_s30 = smov 4  }
  0x15   :  { %44 = dma.hbm_to_vmem [thread:$0]  %s4876_s1, 1024, %s39_s18, [#allocation7], %s4580_s29, %s4580_s29, %s4581_s30  }
  0x16   :  { %s4436_s16 = scalar_lea.hbm %s4880_s5, 8192 }
  0x17   :  { %p4437_p8 = scmp.ne.s32.totalorder %s4880_s5, %s4436_s16  ;;  %p4440_p9 = scmp.lt.u32.totalorder %s4436_s16, %s4880_s5 }
  0x19   :  { %p4442_p10 = pnand %p4440_p9, %p4437_p8 }
  0x1b   :  { %4445 = shalt.err (!%p4442_p10)
}
  0x1c   :  { %s4446_s23 = scalar_lea.vmem %s4656_s20, 8192  ;;  %p4451_p12 = scmp.lt.s32.totalorder %s4656_s20, %s4656_s20 }
  0x1d   :  { %p4447_p11 = scmp.ne.s32.totalorder %s4656_s20, %s4446_s23  ;;  %p4452_p13 = scmp.lt.s32.totalorder %s4446_s23, %s4446_s23 }
  0x1f   :  { %p4453_p0 = por %p4452_p13, %p4451_p12 }
  0x21   :  { %p4454_p1 = pnand %p4453_p0, %p4447_p11 }
  0x23   :  { %4457 = shalt.err (!%p4454_p1)
}
  0x24   :  { %s4582_s1 = smov 256   ;;  %s4583_s18 = smov 16  }
  0x25   :  { %72 = dma.hbm_to_vmem [thread:$0]  %s4880_s5, 8192, %s4656_s20, [#allocation10], %s4582_s1, %s4582_s1, %s4583_s18  }
  0x26   :  { %s4584_s26 = smov [#allocation3]   ;;  %s4585_s28 = smov [#allocation8]  }
  0x27   :  { %s26_s27 = sshll.u32 %s4584_s26, 4  ;;  %s52_s12 = sshll.u32 %s4585_s28, 4  ;;  %s27_s27 = int_to_ptr.vmem [resolvable:$true] %s26_s27  ;;  %s4690_s12 = int_to_ptr.vmem [resolvable:$true] %s52_s12 }
  0x28   :  { %s4458_s15 = scalar_lea.hbm %s4875_s0, 128 }
  0x29   :  { %p4459_p2 = scmp.ne.s32.totalorder %s4875_s0, %s4458_s15  ;;  %p4462_p3 = scmp.lt.u32.totalorder %s4458_s15, %s4875_s0 }
  0x2b   :  { %p4464_p4 = pnand %p4462_p3, %p4459_p2 }
  0x2d   :  { %4467 = shalt.err (!%p4464_p4)
}
  0x2e   :  { %s4468_s5 = scalar_lea.vmem %s27_s27, 128  ;;  %p4473_p6 = scmp.lt.s32.totalorder %s27_s27, %s27_s27 }
  0x2f   :  { %p4469_p5 = scmp.ne.s32.totalorder %s27_s27, %s4468_s5  ;;  %p4474_p7 = scmp.lt.s32.totalorder %s4468_s5, %s4468_s5 }
  0x31   :  { %p4475_p8 = por %p4474_p7, %p4473_p6 }
  0x33   :  { %p4476_p9 = pnand %p4475_p8, %p4469_p5 }
  0x35   :  { %4479 = shalt.err (!%p4476_p9)
}
  0x36   :  { %32 = dma.hbm_to_vmem [thread:$0]  %s4875_s0, 128, %s27_s27, [#allocation4], %s4580_s29, %s4580_s29, %s4581_s30  }
  0x37   :  { %s4480_s18 = scalar_lea.hbm %s4878_s3, 2048 }
  0x38   :  { %p4481_p10 = scmp.ne.s32.totalorder %s4878_s3, %s4480_s18  ;;  %p4484_p11 = scmp.lt.u32.totalorder %s4480_s18, %s4878_s3 }
  0x3a   :  { %p4486_p12 = pnand %p4484_p11, %p4481_p10 }
  0x3c   :  { %4489 = shalt.err (!%p4486_p12)
}
  0x3d   :  { %s4490_s13 = scalar_lea.vmem %s4690_s12, 2048  ;;  %p4495_p0 = scmp.lt.s32.totalorder %s4690_s12, %s4690_s12 }
  0x3e   :  { %p4491_p13 = scmp.ne.s32.totalorder %s4690_s12, %s4490_s13  ;;  %p4496_p1 = scmp.lt.s32.totalorder %s4490_s13, %s4490_s13 }
  0x40   :  { %p4497_p2 = por %p4496_p1, %p4495_p0 }
  0x42   :  { %p4498_p3 = pnand %p4497_p2, %p4491_p13 }
  0x44   :  { %4501 = shalt.err (!%p4498_p3)
}
  0x45   :  { %s4586_s0 = smov 128   ;;  %s4587_s27 = smov 8  }
  0x46   :  { %58 = dma.hbm_to_vmem [thread:$0]  %s4878_s3, 2048, %s4690_s12, [#allocation7], %s4586_s0, %s4586_s0, %s4587_s27  }
  0x47   :  { %s4588_s16 = smov [#allocation11]   ;;  %s4502_s5 = scalar_lea.hbm %s4882_s7, 32768 }
  0x48   :  { %s80_s17 = sshll.u32 %s4588_s16, 4  ;;  %p4503_p4 = scmp.ne.s32.totalorder %s4882_s7, %s4502_s5  ;;  %s81_s17 = int_to_ptr.vmem [resolvable:$true] %s80_s17 }
  0x49   :  { %p4506_p5 = scmp.lt.u32.totalorder %s4502_s5, %s4882_s7 }
  0x4b   :  { %p4508_p6 = pnand %p4506_p5, %p4503_p4 }
  0x4d   :  { %4511 = shalt.err (!%p4508_p6)
}
  0x4e   :  { %s4512_s18 = scalar_lea.vmem %s81_s17, 32768  ;;  %p4517_p8 = scmp.lt.s32.totalorder %s81_s17, %s81_s17 }
  0x4f   :  { %p4513_p7 = scmp.ne.s32.totalorder %s81_s17, %s4512_s18  ;;  %p4518_p9 = scmp.lt.s32.totalorder %s4512_s18, %s4512_s18 }
  0x51   :  { %p4519_p10 = por %p4518_p9, %p4517_p8 }
  0x53   :  { %p4520_p11 = pnand %p4519_p10, %p4513_p7 }
  0x55   :  { %4523 = shalt.err (!%p4520_p11)
}
  0x56   :  { %s4589_s3 = smov 512   ;;  %s4590_s12 = smov 32  }
  0x57   :  { %86 = dma.hbm_to_vmem [thread:$0]  %s4882_s7, 32768, %s81_s17, [#allocation10], %s4589_s3, %s4589_s3, %s4590_s12  }
  0x58   :  { %s4591_s26 = smov [#allocation12]   ;;  %s4524_s15 = scalar_lea.hbm %s4884_s9, 8192 }
  0x59   :  { %s94_s28 = sshll.u32 %s4591_s26, 4  ;;  %p4525_p12 = scmp.ne.s32.totalorder %s4884_s9, %s4524_s15  ;;  %s95_s28 = int_to_ptr.vmem [resolvable:$true] %s94_s28 }
  0x5a   :  { %p4528_p13 = scmp.lt.u32.totalorder %s4524_s15, %s4884_s9 }
  0x5c   :  { %p4530_p0 = pnand %p4528_p13, %p4525_p12 }
  0x5e   :  { %4533 = shalt.err (!%p4530_p0)
}
  0x5f   :  { %s4534_s20 = scalar_lea.vmem %s95_s28, 8192  ;;  %p4539_p2 = scmp.lt.s32.totalorder %s95_s28, %s95_s28 }
  0x60   :  { %p4535_p1 = scmp.ne.s32.totalorder %s95_s28, %s4534_s20  ;;  %p4540_p3 = scmp.lt.s32.totalorder %s4534_s20, %s4534_s20 }
  0x62   :  { %p4541_p4 = por %p4540_p3, %p4539_p2 }
  0x64   :  { %p4542_p5 = pnand %p4541_p4, %p4535_p1 }
  0x66   :  { %4545 = shalt.err (!%p4542_p5)
}
  0x67   :  { %100 = dma.hbm_to_vmem [thread:$0]  %s4884_s9, 8192, %s95_s28, [#allocation13], %s4580_s29, %s4580_s29, %s4581_s30  }
  0x68   :  { %4568 = dma.done.wait [#allocation4], 128  }
  0x69   :  { %4569 = vsyncadd [#allocation4], 4294967168 }
  0x6a   :  { %4570 = dma.done.wait [#allocation7], 3072  }
  0x6b   :  { %4571 = vsyncadd [#allocation7], 4294964224 }
  0x6c   :  { %4572 = dma.done.wait [#allocation10], 40960  }
  0x6d   :  { %4573 = vsyncadd [#allocation10], 4294926336 }
  0x6e   :  { %4574 = dma.done.wait [#allocation13], 8192  }
  0x6f   :  { %4575 = vsyncadd [#allocation13], 4294959104  ;;  %v4592_v0 = vmov 0.0   ;;  %vm4593_vm0 = vmmov 0   ;;  %v4217_v1 = vld [vmem:[#allocation6] sm:$0xff]   ;;  %v4218_v2 = vld [vmem:[#allocation6 + $0x8] sm:$0xff]  }
  0x70   :  { %4147 = vmatprep.subr.bf16.mxu0 %v4592_v0  ;;  %4163 = vmatprep.mubr.msk.bf16.mxu0 %vm4593_vm0, %v4592_v0  ;;  %v4219_v3 = vld [vmem:[#allocation6 + $0x10] sm:$0xff]   ;;  %v4220_v4 = vld [vmem:[#allocation6 + $0x18] sm:$0xff]   ;;  %v4226_v5 = vld [vmem:[#allocation8 + $0x4] ss:$8 sps:$4 sm:$0xff]   ;;  %v4594_v26 = vmov 0  }
  0x71   :  { %4148 = vmatpush3.bf16.msra.mxu0 %v4217_v1  ;;  %v4228_v6 = vld [vmem:[#allocation8] ss:$8 sps:$4 sm:$0xff]   ;;  %361 = vmatprep.subr.bf16.mxu1 %v4226_v5  ;;  %v4229_v7 = vld [vmem:[#allocation8 + $0x14] ss:$8 sps:$4 sm:$0xff]   ;;  %v4231_v8 = vld [vmem:[#allocation8 + $0x10] ss:$8 sps:$4 sm:$0xff]  }
  0x72   :  { %4149 = vmatprep.subr.bf16.mxu0 %v4592_v0  ;;  %362 = vmatpush1.bf16.msra.mxu1 %v4228_v6  ;;  %v4232_v9 = vld [vmem:[#allocation8 + $0x24] ss:$8 sps:$4 sm:$0xff]   ;;  %v4234_v12 = vld [vmem:[#allocation8 + $0x20] ss:$8 sps:$4 sm:$0xff]   ;;  %v4235_v13 = vld [vmem:[#allocation8 + $0x34] ss:$8 sps:$4 sm:$0xff]  }
  0x73   :  { %363 = vmatprep.subr.bf16.mxu1 %v4229_v7  ;;  %v4221_v10 = vld [vmem:[#allocation6 + $0x20] sm:$0xff]   ;;  %v4222_v11 = vld [vmem:[#allocation6 + $0x28] sm:$0xff]   ;;  %v4237_v14 = vld [vmem:[#allocation8 + $0x30] ss:$8 sps:$4 sm:$0xff]   ;;  %393 = vmatprep.mubr.bf16.mxu1 %v4594_v26 }
  0x74   :  { %v4238_v15 = vld [vmem:[#allocation8 + $0x44] ss:$8 sps:$4 sm:$0xff]   ;;  %v4223_v16 = vld [vmem:[#allocation6 + $0x30] sm:$0xff]   ;;  %v4240_v17 = vld [vmem:[#allocation8 + $0x40] ss:$8 sps:$4 sm:$0xff]  }
  0x75   :  { %4150 = vmatpush3.bf16.msra.mxu0 %v4218_v2  ;;  %v4241_v18 = vld [vmem:[#allocation8 + $0x54] ss:$8 sps:$4 sm:$0xff]   ;;  %v4243_v20 = vld [vmem:[#allocation8 + $0x50] ss:$8 sps:$4 sm:$0xff]   ;;  %v4244_v22 = vld [vmem:[#allocation8 + $0x64] ss:$8 sps:$4 sm:$0xff]  }
  0x76   :  { %4151 = vmatprep.subr.bf16.mxu0 %v4592_v0  ;;  %364 = vmatpush1.bf16.msra.mxu1 %v4231_v8  ;;  %v4224_v19 = vld [vmem:[#allocation6 + $0x38] sm:$0xff]   ;;  %v4246_v23 = vld [vmem:[#allocation8 + $0x60] ss:$8 sps:$4 sm:$0xff]   ;;  %v4252_v28 = vld [vmem:[#allocation9 + $0x4] ss:$16 sps:$4 sm:$0xff]  }
  0x77   :  { %365 = vmatprep.subr.bf16.mxu1 %v4232_v9  ;;  %v4225_v21 = vld [vmem:[#allocation3] sm:$0xff]   ;;  %v4250_v27 = vld [vmem:[#allocation9] ss:$16 sps:$4 sm:$0xff]   ;;  %v4258_v30 = vld [vmem:[#allocation9 + $0x24] ss:$16 sps:$4 sm:$0xff]  }
  0x78   :  { %v4247_v24 = vld [vmem:[#allocation8 + $0x74] ss:$8 sps:$4 sm:$0xff]   ;;  %v4249_v25 = vld [vmem:[#allocation8 + $0x70] ss:$8 sps:$4 sm:$0xff]  }
  0x79   :  { %4152 = vmatpush3.bf16.msra.mxu0 %v4219_v3  ;;  %v4255_v29 = vld [vmem:[#allocation9 + $0xc] ss:$16 sps:$4 sm:$0xff]   ;;  %v4256_v31 = vld [vmem:[#allocation9 + $0x20] ss:$16 sps:$4 sm:$0xff]   ;;  %v4264_v32 = vld [vmem:[#allocation9 + $0x44] ss:$16 sps:$4 sm:$0xff]  }
  0x7a   :  { %4153 = vmatprep.subr.bf16.mxu0 %v4592_v0  ;;  %366 = vmatpush1.bf16.msra.mxu1 %v4234_v12  ;;  %v4262_v33 = vld [vmem:[#allocation9 + $0x40] ss:$16 sps:$4 sm:$0xff]   ;;  %v4270_v34 = vld [vmem:[#allocation9 + $0x64] ss:$16 sps:$4 sm:$0xff]   ;;  %v3639_v54 = vld [vmem:[%s4877_s2] ss:$0 sm:$0xff] }
  0x7b   :  { %367 = vmatprep.subr.bf16.mxu1 %v4235_v13  ;;  %v4268_v35 = vld [vmem:[#allocation9 + $0x60] ss:$16 sps:$4 sm:$0xff]   ;;  %v4276_v36 = vld [vmem:[#allocation9 + $0x84] ss:$16 sps:$4 sm:$0xff]   ;;  %v4253_v1 = vld [vmem:[#allocation9 + $0x8] ss:$16 sps:$4 sm:$0xff]  }
  0x7c   :  { %v4274_v37 = vld [vmem:[#allocation9 + $0x80] ss:$16 sps:$4 sm:$0xff]   ;;  %v4282_v38 = vld [vmem:[#allocation9 + $0xa4] ss:$16 sps:$4 sm:$0xff]   ;;  %v4261_v3 = vld [vmem:[#allocation9 + $0x2c] ss:$16 sps:$4 sm:$0xff]  }
  0x7d   :  { %4154 = vmatpush3.bf16.msra.mxu0 %v4220_v4  ;;  %v4280_v39 = vld [vmem:[#allocation9 + $0xa0] ss:$16 sps:$4 sm:$0xff]   ;;  %v4288_v40 = vld [vmem:[#allocation9 + $0xc4] ss:$16 sps:$4 sm:$0xff]   ;;  %v4259_v4 = vld [vmem:[#allocation9 + $0x28] ss:$16 sps:$4 sm:$0xff]  }
  0x7e   :  { %4155 = vmatprep.subr.bf16.mxu0 %v4592_v0  ;;  %368 = vmatpush1.bf16.msra.mxu1 %v4237_v14  ;;  %v4286_v41 = vld [vmem:[#allocation9 + $0xc0] ss:$16 sps:$4 sm:$0xff]   ;;  %v4294_v42 = vld [vmem:[#allocation9 + $0xe4] ss:$16 sps:$4 sm:$0xff]   ;;  %v4267_v5 = vld [vmem:[#allocation9 + $0x4c] ss:$16 sps:$4 sm:$0xff]  }
  0x7f   :  { %369 = vmatprep.subr.bf16.mxu1 %v4238_v15  ;;  %v4292_v43 = vld [vmem:[#allocation9 + $0xe0] ss:$16 sps:$4 sm:$0xff]   ;;  %v4300_v44 = vld [vmem:[#allocation9 + $0x104] ss:$16 sps:$4 sm:$0xff]   ;;  %v4265_v6 = vld [vmem:[#allocation9 + $0x48] ss:$16 sps:$4 sm:$0xff]  }
  0x80   :  { %v4298_v45 = vld [vmem:[#allocation9 + $0x100] ss:$16 sps:$4 sm:$0xff]   ;;  %v4306_v46 = vld [vmem:[#allocation9 + $0x124] ss:$16 sps:$4 sm:$0xff]   ;;  %v4273_v7 = vld [vmem:[#allocation9 + $0x6c] ss:$16 sps:$4 sm:$0xff]  }
  0x81   :  { %4156 = vmatpush3.bf16.msra.mxu0 %v4221_v10  ;;  %v4304_v47 = vld [vmem:[#allocation9 + $0x120] ss:$16 sps:$4 sm:$0xff]   ;;  %v4312_v48 = vld [vmem:[#allocation9 + $0x144] ss:$16 sps:$4 sm:$0xff]   ;;  %v4271_v8 = vld [vmem:[#allocation9 + $0x68] ss:$16 sps:$4 sm:$0xff]  }
  0x82   :  { %4157 = vmatprep.subr.bf16.mxu0 %v4592_v0  ;;  %370 = vmatpush1.bf16.msra.mxu1 %v4240_v17  ;;  %v4310_v49 = vld [vmem:[#allocation9 + $0x140] ss:$16 sps:$4 sm:$0xff]   ;;  %v4318_v50 = vld [vmem:[#allocation9 + $0x164] ss:$16 sps:$4 sm:$0xff]   ;;  %v4279_v9 = vld [vmem:[#allocation9 + $0x8c] ss:$16 sps:$4 sm:$0xff]  }
  0x83   :  { %371 = vmatprep.subr.bf16.mxu1 %v4241_v18  ;;  %v4316_v51 = vld [vmem:[#allocation9 + $0x160] ss:$16 sps:$4 sm:$0xff]   ;;  %v4324_v52 = vld [vmem:[#allocation9 + $0x184] ss:$16 sps:$4 sm:$0xff]   ;;  %v4277_v10 = vld [vmem:[#allocation9 + $0x88] ss:$16 sps:$4 sm:$0xff]  }
  0x84   :  { %v4322_v53 = vld [vmem:[#allocation9 + $0x180] ss:$16 sps:$4 sm:$0xff]   ;;  %v4283_v12 = vld [vmem:[#allocation9 + $0xa8] ss:$16 sps:$4 sm:$0xff]   ;;  %v4291_v13 = vld [vmem:[#allocation9 + $0xcc] ss:$16 sps:$4 sm:$0xff]  }
  0x85   :  { %4158 = vmatpush3.bf16.msra.mxu0 %v4222_v11  ;;  %v4285_v11 = vld [vmem:[#allocation9 + $0xac] ss:$16 sps:$4 sm:$0xff]   ;;  %v4289_v14 = vld [vmem:[#allocation9 + $0xc8] ss:$16 sps:$4 sm:$0xff]  }
  0x86   :  { %4159 = vmatprep.subr.bf16.mxu0 %v4592_v0  ;;  %372 = vmatpush1.bf16.msra.mxu1 %v4243_v20  ;;  %v4297_v15 = vld [vmem:[#allocation9 + $0xec] ss:$16 sps:$4 sm:$0xff]   ;;  %v4301_v18 = vld [vmem:[#allocation9 + $0x108] ss:$16 sps:$4 sm:$0xff]  }
  0x87   :  { %373 = vmatprep.subr.bf16.mxu1 %v4244_v22  ;;  %v4303_v17 = vld [vmem:[#allocation9 + $0x10c] ss:$16 sps:$4 sm:$0xff]   ;;  %v4307_v20 = vld [vmem:[#allocation9 + $0x128] ss:$16 sps:$4 sm:$0xff]  }
  0x88   :  { %v4313_v22 = vld [vmem:[#allocation9 + $0x148] ss:$16 sps:$4 sm:$0xff]  }
  0x89   :  { %4160 = vmatpush3.bf16.msra.mxu0 %v4223_v16  ;;  %v4295_v16 = vld [vmem:[#allocation9 + $0xe8] ss:$16 sps:$4 sm:$0xff]  }
  0x8a   :  { %4161 = vmatprep.subr.bf16.mxu0 %v4592_v0  ;;  %374 = vmatpush1.bf16.msra.mxu1 %v4246_v23  ;;  %v4321_v23 = vld [vmem:[#allocation9 + $0x16c] ss:$16 sps:$4 sm:$0xff]   ;;  %v4325_v26 = vld [vmem:[#allocation9 + $0x188] ss:$16 sps:$4 sm:$0xff]  }
  0x8b   :  { %375 = vmatprep.subr.bf16.mxu1 %v4247_v24  ;;  %v4319_v24 = vld [vmem:[#allocation9 + $0x168] ss:$16 sps:$4 sm:$0xff]  }
  0x8d   :  { %4162 = vmatpush3.bf16.msra.mxu0 %v4224_v19  ;;  %v4309_v19 = vld [vmem:[#allocation9 + $0x12c] ss:$16 sps:$4 sm:$0xff]  }
  0x8e   :  { %376 = vmatpush1.bf16.msra.mxu1 %v4249_v25  ;;  %824 = vmatprep.subr.bf16.mxu0 %v4252_v28  ;;  %v4327_v25 = vld [vmem:[#allocation9 + $0x18c] ss:$16 sps:$4 sm:$0xff]  }
  0x8f   :  { %867 = vmatprep.subr.bf16.mxu1 %v4255_v29  ;;  %v4333_v28 = vld [vmem:[#allocation9 + $0x1ac] ss:$16 sps:$4 sm:$0xff]   ;;  %v4328_v29 = vld [vmem:[#allocation9 + $0x1a0] ss:$16 sps:$4 sm:$0xff]  }
  0x90   :  { %4164 = vmatmul.mubr.bf16.vlgmr.msra.gmra.mrb[0].mxu0 %v4225_v21  ;;  %v4315_v21 = vld [vmem:[#allocation9 + $0x14c] ss:$16 sps:$4 sm:$0xff]  }
  0x91   :  { %825 = vmatpush1.bf16.msra.mxu0 %v4250_v27  ;;  %v4330_v27 = vld [vmem:[#allocation9 + $0x1a4] ss:$16 sps:$4 sm:$0xff]  }
  0x92   :  { %826 = vmatprep.subr.bf16.mxu0 %v4258_v30  ;;  %v4331_v30 = vld [vmem:[#allocation9 + $0x1a8] ss:$16 sps:$4 sm:$0xff]  }
  0x95   :  { %827 = vmatpush1.bf16.msra.mxu0 %v4256_v31  ;;  %v4336_v31 = vld [vmem:[#allocation9 + $0x1c4] ss:$16 sps:$4 sm:$0xff]  }
  0x96   :  { %828 = vmatprep.subr.bf16.mxu0 %v4264_v32  ;;  %v4339_v32 = vld [vmem:[#allocation9 + $0x1cc] ss:$16 sps:$4 sm:$0xff]  }
  0x99   :  { %829 = vmatpush1.bf16.msra.mxu0 %v4262_v33  ;;  %v4334_v33 = vld [vmem:[#allocation9 + $0x1c0] ss:$16 sps:$4 sm:$0xff]  }
  0x9a   :  { %830 = vmatprep.subr.bf16.mxu0 %v4270_v34  ;;  %v4337_v34 = vld [vmem:[#allocation9 + $0x1c8] ss:$16 sps:$4 sm:$0xff]  }
  0x9d   :  { %831 = vmatpush1.bf16.msra.mxu0 %v4268_v35  ;;  %v4342_v35 = vld [vmem:[#allocation9 + $0x1e4] ss:$16 sps:$4 sm:$0xff]  }
  0x9e   :  { %832 = vmatprep.subr.bf16.mxu0 %v4276_v36  ;;  %v4345_v36 = vld [vmem:[#allocation9 + $0x1ec] ss:$16 sps:$4 sm:$0xff]  }
  0xa1   :  { %833 = vmatpush1.bf16.msra.mxu0 %v4274_v37  ;;  %v4340_v37 = vld [vmem:[#allocation9 + $0x1e0] ss:$16 sps:$4 sm:$0xff]  }
  0xa2   :  { %834 = vmatprep.subr.bf16.mxu0 %v4282_v38  ;;  %v4343_v38 = vld [vmem:[#allocation9 + $0x1e8] ss:$16 sps:$4 sm:$0xff]  }
  0xa5   :  { %835 = vmatpush1.bf16.msra.mxu0 %v4280_v39  ;;  %v938_v39 = vld [vmem:[#allocation11] sm:$0xff] }
  0xa6   :  { %836 = vmatprep.subr.bf16.mxu0 %v4288_v40  ;;  %v942_v40 = vld [vmem:[#allocation11 + $0x20] sm:$0xff] }
  0xa9   :  { %837 = vmatpush1.bf16.msra.mxu0 %v4286_v41  ;;  %v939_v41 = vld [vmem:[#allocation11 + $0x8] sm:$0xff] }
  0xaa   :  { %838 = vmatprep.subr.bf16.mxu0 %v4294_v42  ;;  %v3729_v42 = vcombine.low %v938_v39, %v942_v40 }
  0xad   :  { %839 = vmatpush1.bf16.msra.mxu0 %v4292_v43  ;;  %v3730_v43 = vcombine.high %v938_v39, %v942_v40  ;;  %v982_v39 = vld [vmem:[#allocation11 + $0x160] sm:$0xff]  ;;  %v979_v40 = vld [vmem:[#allocation11 + $0x148] sm:$0xff] }
  0xae   :  { %840 = vmatprep.subr.bf16.mxu0 %v4300_v44  ;;  %v943_v44 = vld [vmem:[#allocation11 + $0x28] sm:$0xff] }
  0xb1   :  { %841 = vmatpush1.bf16.msra.mxu0 %v4298_v45  ;;  %v3731_v45 = vcombine.low %v939_v41, %v943_v44 }
  0xb2   :  { %842 = vmatprep.subr.bf16.mxu0 %v4306_v46  ;;  %v3732_v46 = vcombine.high %v939_v41, %v943_v44  ;;  %v983_v41 = vld [vmem:[#allocation11 + $0x168] sm:$0xff] }
  0xb5   :  { %843 = vmatpush1.bf16.msra.mxu0 %v4304_v47  ;;  %v271_v47 = vlaneseq }
  0xb6   :  { %844 = vmatprep.subr.bf16.mxu0 %v4312_v48 }
  0xb7   :  { %v4757_v48 = vshrl.u32 %v271_v47, 7  ;;  %v990_v47 = vld [vmem:[#allocation11 + $0x1a0] sm:$0xff] }
  0xb9   :  { %845 = vmatpush1.bf16.msra.mxu0 %v4310_v49  ;;  %v4760_v49 = vsub.s32 0, %v4757_v48 }
  0xba   :  { %846 = vmatprep.subr.bf16.mxu0 %v4318_v50  ;;  %v269_v50 = vld [vmem:[%s4879_s4] sm:$0x3] }
  0xbd   :  { %847 = vmatpush1.bf16.msra.mxu0 %v4316_v51  ;;  %v4766_v51 = vsub.s32 1, %v4757_v48 }
  0xbe   :  { %848 = vmatprep.subr.bf16.mxu0 %v4324_v52  ;;  %v274_v52 = vrot.slane %v269_v50, %v4760_v49 }
  0xc1   :  { %849 = vmatpush1.bf16.msra.mxu0 %v4322_v53  ;;  %v278_v53 = vrot.slane %v269_v50, %v4766_v51  ;;  %v987_v50 = vld [vmem:[#allocation11 + $0x188] sm:$0xff] }
  0xc2   :  { %850 = vmatprep.subr.bf16.mxu0 %v4330_v27 }
  0xc5   :  { %851 = vmatpush1.bf16.msra.mxu0 %v4328_v29 }
  0xc6   :  { %852 = vmatprep.subr.bf16.mxu0 %v4336_v31  ;;  %v974_v31 = vld [vmem:[#allocation11 + $0x120] sm:$0xff] }
  0xc9   :  { %853 = vmatpush1.bf16.msra.mxu0 %v4334_v33  ;;  %v975_v33 = vld [vmem:[#allocation11 + $0x128] sm:$0xff] }
  0xca   :  { %854 = vmatprep.subr.bf16.mxu0 %v4342_v35 }
  0xcd   :  { %855 = vmatpush1.bf16.msra.mxu0 %v4340_v37 }
  0xce   :  { %2516 = vmatprep.subr.bf16.mxu0 %v3730_v43 }
 0x163   :  { %v239_v55 = vpop.f32.mrb[0].mxu0 }
 0x164   :  { %v240_v56 = vadd.f32 %v3639_v54, %v239_v55  ;;  %v4165_v57 = vpop.f32.mrb[1].mxu0 }
 0x165   :  { %v242_v58 = vpop.f32.mrb[2].mxu0 }
 0x166   :  { %v248_v59 = vmul.f32 0.2, %v240_v56  ;;  %v243_v60 = vadd.f32 %v3639_v54, %v242_v58  ;;  %v4166_v61 = vpop.f32.mrb[3].mxu0  ;;  %vm246_vm1 = vcmp.gt.f32.partialorder %v240_v56, 0.0 }
 0x168   :  { %vm247_vm2 = vcmp.gt.f32.partialorder %v243_v60, 0.0  ;;  %v249_v62 = vmul.f32 0.2, %v243_v60  ;;  %v250_v63 = vsel %vm246_vm1, %v240_v56, %v248_v59 }
 0x16a   :  { %v251_v0 = vsel %vm247_vm2, %v243_v60, %v249_v62 }
 0x16b   :  { %v252_v2 = vpack.c.bf16 %v251_v0, %v250_v63 }
 0x16d   :  { %394 = vmatmul.mubr.bf16.vlgmr.msra.gmra.mrb[0].mxu1 %v252_v2  ;;  %v946_v2 = vld [vmem:[#allocation11 + $0x40] sm:$0xff] }
 0x16e   :  { %868 = vmatpush1.bf16.msra.mxu1 %v4253_v1 }
 0x16f   :  { %869 = vmatprep.subr.bf16.mxu1 %v4261_v3 }
 0x172   :  { %870 = vmatpush1.bf16.msra.mxu1 %v4259_v4 }
 0x173   :  { %871 = vmatprep.subr.bf16.mxu1 %v4267_v5  ;;  %v950_v5 = vld [vmem:[#allocation11 + $0x60] sm:$0xff] }
 0x176   :  { %872 = vmatpush1.bf16.msra.mxu1 %v4265_v6  ;;  %v947_v6 = vld [vmem:[#allocation11 + $0x48] sm:$0xff] }
 0x177   :  { %873 = vmatprep.subr.bf16.mxu1 %v4273_v7  ;;  %v951_v7 = vld [vmem:[#allocation11 + $0x68] sm:$0xff] }
 0x17a   :  { %874 = vmatpush1.bf16.msra.mxu1 %v4271_v8 }
 0x17b   :  { %875 = vmatprep.subr.bf16.mxu1 %v4279_v9 }
 0x17e   :  { %876 = vmatpush1.bf16.msra.mxu1 %v4277_v10 }
 0x17f   :  { %877 = vmatprep.subr.bf16.mxu1 %v4285_v11 }
 0x182   :  { %878 = vmatpush1.bf16.msra.mxu1 %v4283_v12  ;;  %v3738_v12 = vcombine.high %v946_v2, %v950_v5 }
 0x183   :  { %879 = vmatprep.subr.bf16.mxu1 %v4291_v13  ;;  %v3740_v13 = vcombine.high %v947_v6, %v951_v7 }
 0x186   :  { %880 = vmatpush1.bf16.msra.mxu1 %v4289_v14  ;;  %v954_v14 = vld [vmem:[#allocation11 + $0x80] sm:$0xff] }
 0x187   :  { %881 = vmatprep.subr.bf16.mxu1 %v4297_v15  ;;  %v958_v15 = vld [vmem:[#allocation11 + $0xa0] sm:$0xff] }
 0x18a   :  { %882 = vmatpush1.bf16.msra.mxu1 %v4295_v16  ;;  %v955_v16 = vld [vmem:[#allocation11 + $0x88] sm:$0xff] }
 0x18b   :  { %883 = vmatprep.subr.bf16.mxu1 %v4303_v17  ;;  %v959_v17 = vld [vmem:[#allocation11 + $0xa8] sm:$0xff] }
 0x18c   :  { %v3747_v27 = vcombine.low %v955_v16, %v959_v17 }
 0x18e   :  { %884 = vmatpush1.bf16.msra.mxu1 %v4301_v18  ;;  %v3737_v18 = vcombine.low %v946_v2, %v950_v5  ;;  %v1006_v2 = vld [vmem:[#allocation11 + $0x220] sm:$0xff] }
 0x18f   :  { %885 = vmatprep.subr.bf16.mxu1 %v4309_v19  ;;  %v3739_v19 = vcombine.low %v947_v6, %v951_v7 }
 0x192   :  { %886 = vmatpush1.bf16.msra.mxu1 %v4307_v20  ;;  %v3746_v20 = vcombine.high %v954_v14, %v958_v15 }
 0x193   :  { %887 = vmatprep.subr.bf16.mxu1 %v4315_v21  ;;  %v3748_v21 = vcombine.high %v955_v16, %v959_v17  ;;  %v1018_v17 = vld [vmem:[#allocation11 + $0x280] sm:$0xff] }
 0x196   :  { %888 = vmatpush1.bf16.msra.mxu1 %v4313_v22  ;;  %v962_v22 = vld [vmem:[#allocation11 + $0xc0] sm:$0xff] }
 0x197   :  { %889 = vmatprep.subr.bf16.mxu1 %v4321_v23  ;;  %v966_v23 = vld [vmem:[#allocation11 + $0xe0] sm:$0xff] }
 0x19a   :  { %890 = vmatpush1.bf16.msra.mxu1 %v4319_v24  ;;  %v963_v24 = vld [vmem:[#allocation11 + $0xc8] sm:$0xff] }
 0x19b   :  { %891 = vmatprep.subr.bf16.mxu1 %v4327_v25  ;;  %v967_v25 = vld [vmem:[#allocation11 + $0xe8] sm:$0xff] }
 0x19c   :  { %v3756_v29 = vcombine.high %v963_v24, %v967_v25  ;;  %v3755_v35 = vcombine.low %v963_v24, %v967_v25  ;;  %v1026_v25 = vld [vmem:[#allocation11 + $0x2c0] sm:$0xff] }
 0x19e   :  { %892 = vmatpush1.bf16.msra.mxu1 %v4325_v26  ;;  %v3745_v26 = vcombine.low %v954_v14, %v958_v15 }
 0x19f   :  { %893 = vmatprep.subr.bf16.mxu1 %v4333_v28  ;;  %v3754_v28 = vcombine.high %v962_v22, %v966_v23 }
 0x1a2   :  { %894 = vmatpush1.bf16.msra.mxu1 %v4331_v30  ;;  %v970_v30 = vld [vmem:[#allocation11 + $0x100] sm:$0xff] }
 0x1a3   :  { %895 = vmatprep.subr.bf16.mxu1 %v4339_v32  ;;  %v971_v32 = vld [vmem:[#allocation11 + $0x108] sm:$0xff] }
 0x1a4   :  { %v3764_v37 = vcombine.high %v971_v32, %v975_v33  ;;  %v3763_v43 = vcombine.low %v971_v32, %v975_v33  ;;  %v1034_v33 = vld [vmem:[#allocation11 + $0x300] sm:$0xff] }
 0x1a6   :  { %896 = vmatpush1.bf16.msra.mxu1 %v4337_v34  ;;  %v3753_v34 = vcombine.low %v962_v22, %v966_v23 }
 0x1a7   :  { %897 = vmatprep.subr.bf16.mxu1 %v4345_v36  ;;  %v3762_v36 = vcombine.high %v970_v30, %v974_v31 }
 0x1aa   :  { %898 = vmatpush1.bf16.msra.mxu1 %v4343_v38  ;;  %v978_v38 = vld [vmem:[#allocation11 + $0x140] sm:$0xff] }
 0x1ab   :  { %2602 = vmatprep.subr.bf16.mxu1 %v3732_v46  ;;  %v3770_v44 = vcombine.high %v978_v38, %v982_v39  ;;  %v986_v46 = vld [vmem:[#allocation11 + $0x180] sm:$0xff] }
 0x240   :  { %v395_v54 = vpop.f32.mrb[0].mxu1 }
 0x241   :  { %v396_v55 = vadd.f32 %v395_v54, %v274_v52  ;;  %v397_v56 = vpop.f32.mrb[1].mxu1  ;;  %v3771_v54 = vcombine.low %v979_v40, %v983_v41 }
 0x242   :  { %v398_v57 = vadd.f32 %v397_v56, %v278_v53  ;;  %v399_v58 = vpop.f32.mrb[2].mxu1 }
 0x243   :  { %v408_v59 = vmul.f32 0.2, %v396_v55  ;;  %v400_v60 = vadd.f32 %v399_v58, %v274_v52  ;;  %v401_v61 = vpop.f32.mrb[3].mxu1  ;;  %vm404_vm3 = vcmp.gt.f32.partialorder %v396_v55, 0.0  ;;  %v991_v52 = vld [vmem:[#allocation11 + $0x1a8] sm:$0xff]  ;;  %v998_v58 = vld [vmem:[#allocation11 + $0x1e0] sm:$0xff] }
 0x244   :  { %v409_v62 = vmul.f32 0.2, %v398_v57  ;;  %v402_v63 = vadd.f32 %v401_v61, %v278_v53  ;;  %vm405_vm4 = vcmp.gt.f32.partialorder %v398_v57, 0.0  ;;  %v3769_v53 = vcombine.low %v978_v38, %v982_v39 }
 0x245   :  { %vm406_vm5 = vcmp.gt.f32.partialorder %v400_v60, 0.0  ;;  %v410_v0 = vmul.f32 0.2, %v400_v60  ;;  %v412_v3 = vsel %vm404_vm3, %v396_v55, %v408_v59  ;;  %v3778_v55 = vcombine.high %v986_v46, %v990_v47  ;;  %v995_v59 = vld [vmem:[#allocation11 + $0x1c8] sm:$0xff] }
 0x246   :  { %vm407_vm6 = vcmp.gt.f32.partialorder %v402_v63, 0.0  ;;  %v411_v1 = vmul.f32 0.2, %v402_v63  ;;  %v413_v9 = vsel %vm405_vm4, %v398_v57, %v409_v62  ;;  %v3780_v56 = vcombine.high %v987_v50, %v991_v52  ;;  %v994_v57 = vld [vmem:[#allocation11 + $0x1c0] sm:$0xff] }
 0x247   :  { %v414_v4 = vsel %vm406_vm5, %v400_v60, %v410_v0  ;;  %v999_v60 = vld [vmem:[#allocation11 + $0x1e8] sm:$0xff]  ;;  %v3777_v61 = vcombine.low %v986_v46, %v990_v47  ;;  %v3779_v62 = vcombine.low %v987_v50, %v991_v52  ;;  %v3785_v5 = vcombine.low %v994_v57, %v998_v58 }
 0x248   :  { %v416_v8 = vpack.c.bf16 %v414_v4, %v412_v3  ;;  %v415_v10 = vsel %vm407_vm6, %v402_v63, %v411_v1  ;;  %v3786_v63 = vcombine.high %v994_v57, %v998_v58  ;;  %v3788_v0 = vcombine.high %v995_v59, %v999_v60  ;;  %v1002_v1 = vld [vmem:[#allocation11 + $0x200] sm:$0xff]  ;;  %v1003_v3 = vld [vmem:[#allocation11 + $0x208] sm:$0xff] }
 0x249   :  { %v417_v11 = vpack.c.bf16 %v415_v10, %v413_v9  ;;  %v1007_v4 = vld [vmem:[#allocation11 + $0x228] sm:$0xff]  ;;  %v3787_v6 = vcombine.low %v995_v59, %v999_v60  ;;  %v3794_v7 = vcombine.high %v1002_v1, %v1006_v2  ;;  %v1010_v9 = vld [vmem:[#allocation11 + $0x240] sm:$0xff] }
 0x24a   :  { %v1014_v10 = vld [vmem:[#allocation11 + $0x260] sm:$0xff]  ;;  %v3795_v14 = vcombine.low %v1003_v3, %v1007_v4  ;;  %v1055_v58 = vld [vmem:[#allocation11 + $0x3a8] sm:$0xff] }
 0x24b   :  { %856 = vmatprep.mubr.bf16.mxu0 %v417_v11  ;;  %899 = vmatprep.mubr.bf16.mxu1 %v417_v11  ;;  %v1011_v11 = vld [vmem:[#allocation11 + $0x248] sm:$0xff]  ;;  %v3802_v15 = vcombine.high %v1010_v9, %v1014_v10 }
 0x24c   :  { %857 = vmatmul.mubr.bf16.vlgmr.msra.gmra.mrb[4].mxu0 %v416_v8  ;;  %900 = vmatmul.mubr.bf16.vlgmr.msra.gmra.mrb[4].mxu1 %v416_v8  ;;  %v3796_v8 = vcombine.high %v1003_v3, %v1007_v4 }
 0x24d   :  { %2517 = vmatpush1.bf16.msra.mxu0 %v3729_v42  ;;  %2603 = vmatpush1.bf16.msra.mxu1 %v3731_v45  ;;  %v3761_v42 = vcombine.low %v970_v30, %v974_v31  ;;  %v3772_v45 = vcombine.high %v979_v40, %v983_v41  ;;  %v1042_v41 = vld [vmem:[#allocation11 + $0x340] sm:$0xff] }
 0x24e   :  { %2518 = vmatprep.subr.bf16.mxu0 %v3738_v12  ;;  %2604 = vmatprep.subr.bf16.mxu1 %v3740_v13  ;;  %v1015_v12 = vld [vmem:[#allocation11 + $0x268] sm:$0xff]  ;;  %v3793_v13 = vcombine.low %v1002_v1, %v1006_v2 }
 0x24f   :  { %v3804_v16 = vcombine.high %v1011_v11, %v1015_v12  ;;  %v3803_v22 = vcombine.low %v1011_v11, %v1015_v12  ;;  %v1063_v2 = vld [vmem:[#allocation11 + $0x3e8] sm:$0xff] }
 0x251   :  { %2519 = vmatpush1.bf16.msra.mxu0 %v3737_v18  ;;  %2605 = vmatpush1.bf16.msra.mxu1 %v3739_v19  ;;  %v1022_v18 = vld [vmem:[#allocation11 + $0x2a0] sm:$0xff]  ;;  %v1019_v19 = vld [vmem:[#allocation11 + $0x288] sm:$0xff] }
 0x252   :  { %2520 = vmatprep.subr.bf16.mxu0 %v3746_v20  ;;  %2606 = vmatprep.subr.bf16.mxu1 %v3748_v21  ;;  %v1023_v20 = vld [vmem:[#allocation11 + $0x2a8] sm:$0xff]  ;;  %v3801_v21 = vcombine.low %v1010_v9, %v1014_v10  ;;  %v3810_v23 = vcombine.high %v1018_v17, %v1022_v18 }
 0x253   :  { %v3812_v24 = vcombine.high %v1019_v19, %v1023_v20  ;;  %v3811_v30 = vcombine.low %v1019_v19, %v1023_v20  ;;  %v4778_v10 = vld [vmem:[#allocation11 + $0x428] sm:$0xff] }
 0x255   :  { %2521 = vmatpush1.bf16.msra.mxu0 %v3745_v26  ;;  %2607 = vmatpush1.bf16.msra.mxu1 %v3747_v27  ;;  %v1030_v26 = vld [vmem:[#allocation11 + $0x2e0] sm:$0xff]  ;;  %v1027_v27 = vld [vmem:[#allocation11 + $0x2c8] sm:$0xff] }
 0x256   :  { %2522 = vmatprep.subr.bf16.mxu0 %v3754_v28  ;;  %2608 = vmatprep.subr.bf16.mxu1 %v3756_v29  ;;  %v1031_v28 = vld [vmem:[#allocation11 + $0x2e8] sm:$0xff]  ;;  %v3809_v29 = vcombine.low %v1018_v17, %v1022_v18  ;;  %v3818_v31 = vcombine.high %v1026_v25, %v1030_v26 }
 0x257   :  { %v3820_v32 = vcombine.high %v1027_v27, %v1031_v28  ;;  %v3819_v38 = vcombine.low %v1027_v27, %v1031_v28 }
 0x259   :  { %2523 = vmatpush1.bf16.msra.mxu0 %v3753_v34  ;;  %2609 = vmatpush1.bf16.msra.mxu1 %v3755_v35  ;;  %v1038_v34 = vld [vmem:[#allocation11 + $0x320] sm:$0xff]  ;;  %v1035_v35 = vld [vmem:[#allocation11 + $0x308] sm:$0xff] }
 0x25a   :  { %2524 = vmatprep.subr.bf16.mxu0 %v3762_v36  ;;  %2610 = vmatprep.subr.bf16.mxu1 %v3764_v37  ;;  %v1039_v36 = vld [vmem:[#allocation11 + $0x328] sm:$0xff]  ;;  %v3817_v37 = vcombine.low %v1026_v25, %v1030_v26  ;;  %v3826_v39 = vcombine.high %v1034_v33, %v1038_v34 }
 0x25b   :  { %v3828_v40 = vcombine.high %v1035_v35, %v1039_v36  ;;  %v3827_v46 = vcombine.low %v1035_v35, %v1039_v36 }
 0x25d   :  { %2525 = vmatpush1.bf16.msra.mxu0 %v3761_v42  ;;  %2611 = vmatpush1.bf16.msra.mxu1 %v3763_v43  ;;  %v1046_v42 = vld [vmem:[#allocation11 + $0x360] sm:$0xff]  ;;  %v1043_v43 = vld [vmem:[#allocation11 + $0x348] sm:$0xff] }
 0x25e   :  { %2526 = vmatprep.subr.bf16.mxu0 %v3770_v44  ;;  %2612 = vmatprep.subr.bf16.mxu1 %v3772_v45  ;;  %v1047_v44 = vld [vmem:[#allocation11 + $0x368] sm:$0xff]  ;;  %v3825_v45 = vcombine.low %v1034_v33, %v1038_v34  ;;  %v3834_v47 = vcombine.high %v1042_v41, %v1046_v42  ;;  %v3833_v52 = vcombine.low %v1042_v41, %v1046_v42 }
 0x25f   :  { %v3836_v50 = vcombine.high %v1043_v43, %v1047_v44 }
 0x261   :  { %2527 = vmatpush1.bf16.msra.mxu0 %v3769_v53  ;;  %2613 = vmatpush1.bf16.msra.mxu1 %v3771_v54  ;;  %v3835_v53 = vcombine.low %v1043_v43, %v1047_v44  ;;  %v1050_v54 = vld [vmem:[#allocation11 + $0x380] sm:$0xff] }
 0x262   :  { %2528 = vmatprep.subr.bf16.mxu0 %v3778_v55  ;;  %2614 = vmatprep.subr.bf16.mxu1 %v3780_v56  ;;  %v1054_v55 = vld [vmem:[#allocation11 + $0x3a0] sm:$0xff]  ;;  %v1051_v56 = vld [vmem:[#allocation11 + $0x388] sm:$0xff] }
 0x263   :  { %v3842_v57 = vcombine.high %v1050_v54, %v1054_v55  ;;  %v3841_v59 = vcombine.low %v1050_v54, %v1054_v55  ;;  %v3843_v60 = vcombine.low %v1051_v56, %v1055_v58  ;;  %v1074_v54 = vld [vmem:[#allocation11 + $0x440] sm:$0xff] }
 0x265   :  { %2529 = vmatpush1.bf16.msra.mxu0 %v3777_v61  ;;  %2615 = vmatpush1.bf16.msra.mxu1 %v3779_v62  ;;  %v3844_v61 = vcombine.high %v1051_v56, %v1055_v58  ;;  %v1058_v62 = vld [vmem:[#allocation11 + $0x3c0] sm:$0xff] }
 0x266   :  { %2530 = vmatprep.subr.bf16.mxu0 %v3786_v63  ;;  %2616 = vmatprep.subr.bf16.mxu1 %v3788_v0  ;;  %v1062_v63 = vld [vmem:[#allocation11 + $0x3e0] sm:$0xff]  ;;  %v1059_v0 = vld [vmem:[#allocation11 + $0x3c8] sm:$0xff] }
 0x267   :  { %v3850_v1 = vcombine.high %v1058_v62, %v1062_v63  ;;  %v3849_v3 = vcombine.low %v1058_v62, %v1062_v63  ;;  %v3851_v4 = vcombine.low %v1059_v0, %v1063_v2 }
 0x269   :  { %2531 = vmatpush1.bf16.msra.mxu0 %v3785_v5  ;;  %2617 = vmatpush1.bf16.msra.mxu1 %v3787_v6  ;;  %v3852_v5 = vcombine.high %v1059_v0, %v1063_v2  ;;  %v4770_v6 = vld [vmem:[#allocation11 + $0x400] sm:$0xff] }
 0x26a   :  { %2532 = vmatprep.subr.bf16.mxu0 %v3794_v7  ;;  %2618 = vmatprep.subr.bf16.mxu1 %v3796_v8  ;;  %v4772_v7 = vld [vmem:[#allocation11 + $0x420] sm:$0xff]  ;;  %v4774_v8 = vld [vmem:[#allocation11 + $0x408] sm:$0xff] }
 0x26b   :  { %v3858_v9 = vcombine.high %v4770_v6, %v4772_v7  ;;  %v3857_v11 = vcombine.low %v4770_v6, %v4772_v7  ;;  %v3859_v12 = vcombine.low %v4774_v8, %v4778_v10  ;;  %v1082_v0 = vld [vmem:[#allocation11 + $0x480] sm:$0xff] }
 0x26d   :  { %2533 = vmatpush1.bf16.msra.mxu0 %v3793_v13  ;;  %2619 = vmatpush1.bf16.msra.mxu1 %v3795_v14  ;;  %v3860_v13 = vcombine.high %v4774_v8, %v4778_v10  ;;  %v494_v14 = vsub.s32 2, %v4757_v48 }
 0x26e   :  { %2534 = vmatprep.subr.bf16.mxu0 %v3802_v15  ;;  %2620 = vmatprep.subr.bf16.mxu1 %v3804_v16  ;;  %v482_v15 = vld [vmem:[%s4881_s6] sm:$0xf]  ;;  %v498_v16 = vsub.s32 3, %v4757_v48 }
 0x26f   :  { %v487_v17 = vrot.slane %v482_v15, %v4760_v49  ;;  %v495_v18 = vrot.slane %v482_v15, %v494_v14  ;;  %v491_v19 = vrot.slane %v482_v15, %v4766_v51 }
 0x270   :  { %v499_v20 = vrot.slane %v482_v15, %v498_v16 }
 0x271   :  { %2535 = vmatpush1.bf16.msra.mxu0 %v3801_v21  ;;  %2621 = vmatpush1.bf16.msra.mxu1 %v3803_v22 }
 0x272   :  { %2536 = vmatprep.subr.bf16.mxu0 %v3810_v23  ;;  %2622 = vmatprep.subr.bf16.mxu1 %v3812_v24 }
 0x275   :  { %2537 = vmatpush1.bf16.msra.mxu0 %v3809_v29  ;;  %2623 = vmatpush1.bf16.msra.mxu1 %v3811_v30 }
 0x276   :  { %2538 = vmatprep.subr.bf16.mxu0 %v3818_v31  ;;  %2624 = vmatprep.subr.bf16.mxu1 %v3820_v32 }
 0x279   :  { %2539 = vmatpush1.bf16.msra.mxu0 %v3817_v37  ;;  %2625 = vmatpush1.bf16.msra.mxu1 %v3819_v38 }
 0x27a   :  { %2540 = vmatprep.subr.bf16.mxu0 %v3826_v39  ;;  %2626 = vmatprep.subr.bf16.mxu1 %v3828_v40 }
 0x27d   :  { %2541 = vmatpush1.bf16.msra.mxu0 %v3825_v45  ;;  %2627 = vmatpush1.bf16.msra.mxu1 %v3827_v46 }
 0x27e   :  { %2542 = vmatprep.subr.bf16.mxu0 %v3834_v47  ;;  %2628 = vmatprep.subr.bf16.mxu1 %v3836_v50 }
 0x281   :  { %2543 = vmatpush1.bf16.msra.mxu0 %v3833_v52  ;;  %2629 = vmatpush1.bf16.msra.mxu1 %v3835_v53 }
 0x282   :  { %2544 = vmatprep.subr.bf16.mxu0 %v3842_v57  ;;  %2630 = vmatprep.subr.bf16.mxu1 %v3844_v61  ;;  %v1079_v61 = vld [vmem:[#allocation11 + $0x468] sm:$0xff] }
 0x285   :  { %2545 = vmatpush1.bf16.msra.mxu0 %v3841_v59  ;;  %2631 = vmatpush1.bf16.msra.mxu1 %v3843_v60  ;;  %v1078_v59 = vld [vmem:[#allocation11 + $0x460] sm:$0xff]  ;;  %v1075_v60 = vld [vmem:[#allocation11 + $0x448] sm:$0xff] }
 0x286   :  { %2546 = vmatprep.subr.bf16.mxu0 %v3850_v1  ;;  %2632 = vmatprep.subr.bf16.mxu1 %v3852_v5  ;;  %v3866_v1 = vcombine.high %v1074_v54, %v1078_v59  ;;  %v3868_v2 = vcombine.high %v1075_v60, %v1079_v61  ;;  %v1087_v5 = vld [vmem:[#allocation11 + $0x4a8] sm:$0xff] }
 0x289   :  { %2547 = vmatpush1.bf16.msra.mxu0 %v3849_v3  ;;  %2633 = vmatpush1.bf16.msra.mxu1 %v3851_v4  ;;  %v1086_v3 = vld [vmem:[#allocation11 + $0x4a0] sm:$0xff]  ;;  %v1083_v4 = vld [vmem:[#allocation11 + $0x488] sm:$0xff] }
 0x28a   :  { %2559 = vmatprep.subr.bf16.mxu0 %v3858_v9  ;;  %2645 = vmatprep.subr.bf16.mxu1 %v3860_v13  ;;  %v3865_v9 = vcombine.low %v1074_v54, %v1078_v59  ;;  %v3867_v13 = vcombine.low %v1075_v60, %v1079_v61  ;;  %v3874_v15 = vcombine.high %v1082_v0, %v1086_v3  ;;  %v1131_v59 = vld [vmem:[#allocation11 + $0x608] sm:$0xff] }
 0x28b   :  { %v3873_v6 = vcombine.low %v1082_v0, %v1086_v3  ;;  %v3875_v7 = vcombine.low %v1083_v4, %v1087_v5  ;;  %v1135_v60 = vld [vmem:[#allocation11 + $0x628] sm:$0xff]  ;;  %v1138_v3 = vld [vmem:[#allocation11 + $0x640] sm:$0xff] }
 0x31f   :  { %v858_v21 = vpop.f32.mrb[4].mxu0  ;;  %v901_v22 = vpop.f32.mrb[4].mxu1 }
 0x320   :  { %v859_v23 = vadd.f32 %v858_v21, %v487_v17  ;;  %v902_v24 = vadd.f32 %v901_v22, %v495_v18  ;;  %v860_v25 = vpop.f32.mrb[5].mxu0  ;;  %v903_v26 = vpop.f32.mrb[5].mxu1  ;;  %v1095_v21 = vld [vmem:[#allocation11 + $0x4e8] sm:$0xff] }
 0x321   :  { %v861_v27 = vadd.f32 %v860_v25, %v491_v19  ;;  %v904_v28 = vadd.f32 %v903_v26, %v499_v20  ;;  %v862_v29 = vpop.f32.mrb[6].mxu0  ;;  %v905_v30 = vpop.f32.mrb[6].mxu1  ;;  %v1099_v22 = vld [vmem:[#allocation11 + $0x508] sm:$0xff] }
 0x322   :  { %vm910_vm7 = vcmp.gt.f32.partialorder %v859_v23, 0.0  ;;  %v918_v31 = vmul.f32 0.2, %v859_v23  ;;  %vm912_vm8 = vcmp.gt.f32.partialorder %v902_v24, 0.0  ;;  %v920_v32 = vmul.f32 0.2, %v902_v24 }
 0x323   :  { %vm911_vm9 = vcmp.gt.f32.partialorder %v861_v27, 0.0  ;;  %v919_v33 = vmul.f32 0.2, %v861_v27  ;;  %vm913_vm10 = vcmp.gt.f32.partialorder %v904_v28, 0.0  ;;  %v921_v34 = vmul.f32 0.2, %v904_v28 }
 0x324   :  { %v863_v35 = vadd.f32 %v862_v29, %v487_v17  ;;  %v906_v36 = vadd.f32 %v905_v30, %v495_v18  ;;  %v864_v37 = vpop.f32.mrb[7].mxu0  ;;  %v907_v38 = vpop.f32.mrb[7].mxu1  ;;  %v926_v39 = vsel %vm910_vm7, %v859_v23, %v918_v31  ;;  %v928_v40 = vsel %vm912_vm8, %v902_v24, %v920_v32  ;;  %v1090_v18 = vld [vmem:[#allocation11 + $0x4c0] sm:$0xff]  ;;  %v1103_v23 = vld [vmem:[#allocation11 + $0x528] sm:$0xff] }
 0x325   :  { %v865_v41 = vadd.f32 %v864_v37, %v491_v19  ;;  %v908_v42 = vadd.f32 %v907_v38, %v499_v20  ;;  %v927_v47 = vsel %vm911_vm9, %v861_v27, %v919_v33  ;;  %v929_v50 = vsel %vm913_vm10, %v904_v28, %v921_v34  ;;  %v1094_v19 = vld [vmem:[#allocation11 + $0x4e0] sm:$0xff]  ;;  %v1091_v20 = vld [vmem:[#allocation11 + $0x4c8] sm:$0xff] }
 0x326   :  { %vm914_vm11 = vcmp.gt.f32.partialorder %v863_v35, 0.0  ;;  %v922_v43 = vmul.f32 0.2, %v863_v35  ;;  %vm916_vm12 = vcmp.gt.f32.partialorder %v906_v36, 0.0  ;;  %v924_v44 = vmul.f32 0.2, %v906_v36 }
 0x327   :  { %vm915_vm13 = vcmp.gt.f32.partialorder %v865_v41, 0.0  ;;  %v923_v45 = vmul.f32 0.2, %v865_v41  ;;  %vm917_vm14 = vcmp.gt.f32.partialorder %v908_v42, 0.0  ;;  %v925_v46 = vmul.f32 0.2, %v908_v42 }
 0x328   :  { %v930_v52 = vsel %vm914_vm11, %v863_v35, %v922_v43  ;;  %v932_v53 = vsel %vm916_vm12, %v906_v36, %v924_v44  ;;  %v3876_v17 = vcombine.high %v1083_v4, %v1087_v5  ;;  %v3882_v8 = vcombine.high %v1090_v18, %v1094_v19  ;;  %v1106_v28 = vld [vmem:[#allocation11 + $0x540] sm:$0xff]  ;;  %v1107_v30 = vld [vmem:[#allocation11 + $0x548] sm:$0xff] }
 0x329   :  { %v4799_v55 = vpack.c.bf16 %v930_v52, %v926_v39  ;;  %v4801_v56 = vpack.c.bf16 %v932_v53, %v928_v40  ;;  %v931_v57 = vsel %vm915_vm13, %v865_v41, %v923_v45  ;;  %v933_v58 = vsel %vm917_vm14, %v908_v42, %v925_v46  ;;  %v1110_v29 = vld [vmem:[#allocation11 + $0x560] sm:$0xff]  ;;  %v1111_v31 = vld [vmem:[#allocation11 + $0x568] sm:$0xff] }
 0x32a   :  { %v4803_v62 = vpack.c.bf16 %v931_v57, %v927_v47  ;;  %v4805_v63 = vpack.c.bf16 %v933_v58, %v929_v50  ;;  %v3884_v10 = vcombine.high %v1091_v20, %v1095_v21  ;;  %v3881_v24 = vcombine.low %v1090_v18, %v1094_v19  ;;  %v1114_v36 = vld [vmem:[#allocation11 + $0x580] sm:$0xff]  ;;  %v1115_v38 = vld [vmem:[#allocation11 + $0x588] sm:$0xff] }
 0x32b   :  { %v3883_v25 = vcombine.low %v1091_v20, %v1095_v21  ;;  %v3892_v27 = vcombine.high %v1099_v22, %v1103_v23  ;;  %v3891_v33 = vcombine.low %v1099_v22, %v1103_v23  ;;  %v3898_v34 = vcombine.high %v1106_v28, %v1110_v29  ;;  %v1118_v37 = vld [vmem:[#allocation11 + $0x5a0] sm:$0xff]  ;;  %v1119_v39 = vld [vmem:[#allocation11 + $0x5a8] sm:$0xff] }
 0x32c   :  { %2548 = vmatprep.mubr.bf16.mxu0 %v4803_v62  ;;  %2634 = vmatprep.mubr.bf16.mxu1 %v4803_v62  ;;  %v3900_v35 = vcombine.high %v1107_v30, %v1111_v31  ;;  %v3897_v40 = vcombine.low %v1106_v28, %v1110_v29  ;;  %v3899_v41 = vcombine.low %v1107_v30, %v1111_v31  ;;  %v1122_v44 = vld [vmem:[#allocation11 + $0x5c0] sm:$0xff]  ;;  %v1123_v46 = vld [vmem:[#allocation11 + $0x5c8] sm:$0xff] }
 0x32d   :  { %2549 = vmatmul.mubr.bf16.vlgmr.msra.gmra.mrb[8].mxu0 %v4799_v55  ;;  %2635 = vmatmul.mubr.bf16.vlgmr.msra.gmra.mrb[8].mxu1 %v4799_v55  ;;  %v3906_v42 = vcombine.high %v1114_v36, %v1118_v37  ;;  %v3908_v43 = vcombine.high %v1115_v38, %v1119_v39  ;;  %v1126_v45 = vld [vmem:[#allocation11 + $0x5e0] sm:$0xff]  ;;  %v1127_v47 = vld [vmem:[#allocation11 + $0x5e8] sm:$0xff]  ;;  %v3905_v50 = vcombine.low %v1114_v36, %v1118_v37 }
 0x32e   :  { %2560 = vmatpush1.bf16.msra.mxu0 %v3857_v11  ;;  %2646 = vmatpush1.bf16.msra.mxu1 %v3859_v12  ;;  %v1098_v11 = vld [vmem:[#allocation11 + $0x500] sm:$0xff]  ;;  %v3907_v52 = vcombine.low %v1115_v38, %v1119_v39  ;;  %v3914_v53 = vcombine.high %v1122_v44, %v1126_v45  ;;  %v3916_v54 = vcombine.high %v1123_v46, %v1127_v47  ;;  %v1139_v5 = vld [vmem:[#allocation11 + $0x648] sm:$0xff] }
 0x32f   :  { %2591 = vmatprep.mubr.bf16.mxu0 %v4805_v63  ;;  %2677 = vmatprep.mubr.bf16.mxu1 %v4805_v63  ;;  %v1102_v12 = vld [vmem:[#allocation11 + $0x520] sm:$0xff]  ;;  %v3913_v61 = vcombine.low %v1122_v44, %v1126_v45  ;;  %v3915_v0 = vcombine.low %v1123_v46, %v1127_v47  ;;  %v1147_v21 = vld [vmem:[#allocation11 + $0x688] sm:$0xff] }
 0x330   :  { %2561 = vmatprep.subr.bf16.mxu0 %v3866_v1  ;;  %2647 = vmatprep.subr.bf16.mxu1 %v3868_v2  ;;  %v3890_v26 = vcombine.high %v1098_v11, %v1102_v12  ;;  %v3889_v32 = vcombine.low %v1098_v11, %v1102_v12  ;;  %v1130_v57 = vld [vmem:[#allocation11 + $0x600] sm:$0xff]  ;;  %v3924_v2 = vcombine.high %v1131_v59, %v1135_v60  ;;  %v1155_v23 = vld [vmem:[#allocation11 + $0x6c8] sm:$0xff] }
 0x331   :  { %v1134_v58 = vld [vmem:[#allocation11 + $0x620] sm:$0xff]  ;;  %v1163_v31 = vld [vmem:[#allocation11 + $0x708] sm:$0xff] }
 0x332   :  { %2562 = vmatpush1.bf16.msra.mxu0 %v3865_v9  ;;  %2648 = vmatpush1.bf16.msra.mxu1 %v3867_v13  ;;  %v3922_v1 = vcombine.high %v1130_v57, %v1134_v58  ;;  %v1142_v4 = vld [vmem:[#allocation11 + $0x660] sm:$0xff]  ;;  %v1143_v9 = vld [vmem:[#allocation11 + $0x668] sm:$0xff]  ;;  %v3921_v13 = vcombine.low %v1130_v57, %v1134_v58 }
 0x333   :  { %2563 = vmatprep.subr.bf16.mxu0 %v3874_v15  ;;  %2649 = vmatprep.subr.bf16.mxu1 %v3876_v17  ;;  %v3923_v15 = vcombine.low %v1131_v59, %v1135_v60  ;;  %v3930_v17 = vcombine.high %v1138_v3, %v1142_v4  ;;  %v3932_v18 = vcombine.high %v1139_v5, %v1143_v9  ;;  %v1146_v19 = vld [vmem:[#allocation11 + $0x680] sm:$0xff]  ;;  %v1171_v39 = vld [vmem:[#allocation11 + $0x748] sm:$0xff] }
 0x334   :  { %v1150_v20 = vld [vmem:[#allocation11 + $0x6a0] sm:$0xff]  ;;  %v1179_v47 = vld [vmem:[#allocation11 + $0x788] sm:$0xff] }
 0x335   :  { %v1154_v12 = vld [vmem:[#allocation11 + $0x6c0] sm:$0xff]  ;;  %v1187_v60 = vld [vmem:[#allocation11 + $0x7c8] sm:$0xff] }
 0x336   :  { %2564 = vmatpush1.bf16.msra.mxu0 %v3873_v6  ;;  %2650 = vmatpush1.bf16.msra.mxu1 %v3875_v7  ;;  %v1151_v6 = vld [vmem:[#allocation11 + $0x6a8] sm:$0xff]  ;;  %v3929_v7 = vcombine.low %v1138_v3, %v1142_v4  ;;  %v1158_v22 = vld [vmem:[#allocation11 + $0x6e0] sm:$0xff]  ;;  %v940_v4 = vld [vmem:[#allocation11 + $0x10] sm:$0xff] }
 0x337   :  { %2565 = vmatprep.subr.bf16.mxu0 %v3882_v8  ;;  %2651 = vmatprep.subr.bf16.mxu1 %v3884_v10  ;;  %v3931_v8 = vcombine.low %v1139_v5, %v1143_v9  ;;  %v3938_v10 = vcombine.high %v1146_v19, %v1150_v20  ;;  %v3940_v11 = vcombine.high %v1147_v21, %v1151_v6  ;;  %v1162_v29 = vld [vmem:[#allocation11 + $0x700] sm:$0xff]  ;;  %v944_v5 = vld [vmem:[#allocation11 + $0x30] sm:$0xff]  ;;  %v941_v9 = vld [vmem:[#allocation11 + $0x18] sm:$0xff] }
 0x338   :  { %v1166_v30 = vld [vmem:[#allocation11 + $0x720] sm:$0xff] }
 0x339   :  { %v1170_v37 = vld [vmem:[#allocation11 + $0x740] sm:$0xff] }
 0x33a   :  { %2566 = vmatpush1.bf16.msra.mxu0 %v3881_v24  ;;  %2652 = vmatpush1.bf16.msra.mxu1 %v3883_v25  ;;  %v1159_v24 = vld [vmem:[#allocation11 + $0x6e8] sm:$0xff]  ;;  %v3937_v25 = vcombine.low %v1146_v19, %v1150_v20  ;;  %v1174_v38 = vld [vmem:[#allocation11 + $0x760] sm:$0xff]  ;;  %v948_v20 = vld [vmem:[#allocation11 + $0x50] sm:$0xff] }
 0x33b   :  { %2567 = vmatprep.subr.bf16.mxu0 %v3890_v26  ;;  %2653 = vmatprep.subr.bf16.mxu1 %v3892_v27  ;;  %v3939_v26 = vcombine.low %v1147_v21, %v1151_v6  ;;  %v3946_v27 = vcombine.high %v1154_v12, %v1158_v22  ;;  %v3948_v28 = vcombine.high %v1155_v23, %v1159_v24  ;;  %v1178_v45 = vld [vmem:[#allocation11 + $0x780] sm:$0xff]  ;;  %v952_v21 = vld [vmem:[#allocation11 + $0x70] sm:$0xff]  ;;  %v949_v6 = vld [vmem:[#allocation11 + $0x58] sm:$0xff] }
 0x33c   :  { %v1182_v46 = vld [vmem:[#allocation11 + $0x7a0] sm:$0xff] }
 0x33d   :  { %v1186_v58 = vld [vmem:[#allocation11 + $0x7c0] sm:$0xff] }
 0x33e   :  { %2568 = vmatpush1.bf16.msra.mxu0 %v3889_v32  ;;  %2654 = vmatpush1.bf16.msra.mxu1 %v3891_v33  ;;  %v1167_v32 = vld [vmem:[#allocation11 + $0x728] sm:$0xff]  ;;  %v3945_v33 = vcombine.low %v1154_v12, %v1158_v22  ;;  %v1190_v59 = vld [vmem:[#allocation11 + $0x7e0] sm:$0xff]  ;;  %v956_v22 = vld [vmem:[#allocation11 + $0x90] sm:$0xff] }
 0x33f   :  { %2569 = vmatprep.subr.bf16.mxu0 %v3898_v34  ;;  %2655 = vmatprep.subr.bf16.mxu1 %v3900_v35  ;;  %v3947_v34 = vcombine.low %v1155_v23, %v1159_v24  ;;  %v3954_v35 = vcombine.high %v1162_v29, %v1166_v30  ;;  %v3956_v36 = vcombine.high %v1163_v31, %v1167_v32  ;;  %v960_v23 = vld [vmem:[#allocation11 + $0xb0] sm:$0xff]  ;;  %v957_v24 = vld [vmem:[#allocation11 + $0x98] sm:$0xff] }
 0x342   :  { %2570 = vmatpush1.bf16.msra.mxu0 %v3897_v40  ;;  %2656 = vmatpush1.bf16.msra.mxu1 %v3899_v41  ;;  %v1175_v40 = vld [vmem:[#allocation11 + $0x768] sm:$0xff]  ;;  %v3953_v41 = vcombine.low %v1162_v29, %v1166_v30  ;;  %v964_v30 = vld [vmem:[#allocation11 + $0xd0] sm:$0xff] }
 0x343   :  { %2571 = vmatprep.subr.bf16.mxu0 %v3906_v42  ;;  %2657 = vmatprep.subr.bf16.mxu1 %v3908_v43  ;;  %v3955_v42 = vcombine.low %v1163_v31, %v1167_v32  ;;  %v3962_v43 = vcombine.high %v1170_v37, %v1174_v38  ;;  %v3964_v44 = vcombine.high %v1171_v39, %v1175_v40  ;;  %v968_v31 = vld [vmem:[#allocation11 + $0xf0] sm:$0xff]  ;;  %v965_v32 = vld [vmem:[#allocation11 + $0xd8] sm:$0xff] }
 0x346   :  { %2572 = vmatpush1.bf16.msra.mxu0 %v3905_v50  ;;  %2658 = vmatpush1.bf16.msra.mxu1 %v3907_v52  ;;  %v1183_v50 = vld [vmem:[#allocation11 + $0x7a8] sm:$0xff]  ;;  %v3961_v52 = vcombine.low %v1170_v37, %v1174_v38  ;;  %v972_v38 = vld [vmem:[#allocation11 + $0x110] sm:$0xff] }
 0x347   :  { %2573 = vmatprep.subr.bf16.mxu0 %v3914_v53  ;;  %2659 = vmatprep.subr.bf16.mxu1 %v3916_v54  ;;  %v3963_v53 = vcombine.low %v1171_v39, %v1175_v40  ;;  %v3970_v54 = vcombine.high %v1178_v45, %v1182_v46  ;;  %v3972_v57 = vcombine.high %v1179_v47, %v1183_v50  ;;  %v976_v39 = vld [vmem:[#allocation11 + $0x130] sm:$0xff]  ;;  %v977_v40 = vld [vmem:[#allocation11 + $0x138] sm:$0xff] }
 0x34a   :  { %2574 = vmatpush1.bf16.msra.mxu0 %v3913_v61  ;;  %2660 = vmatpush1.bf16.msra.mxu1 %v3915_v0  ;;  %v1191_v61 = vld [vmem:[#allocation11 + $0x7e8] sm:$0xff]  ;;  %v3969_v0 = vcombine.low %v1178_v45, %v1182_v46  ;;  %v980_v45 = vld [vmem:[#allocation11 + $0x150] sm:$0xff] }
 0x34b   :  { %2575 = vmatprep.subr.bf16.mxu0 %v3922_v1  ;;  %2661 = vmatprep.subr.bf16.mxu1 %v3924_v2  ;;  %v3971_v1 = vcombine.low %v1179_v47, %v1183_v50  ;;  %v3978_v2 = vcombine.high %v1186_v58, %v1190_v59  ;;  %v3980_v3 = vcombine.high %v1187_v60, %v1191_v61  ;;  %v984_v46 = vld [vmem:[#allocation11 + $0x170] sm:$0xff]  ;;  %v981_v47 = vld [vmem:[#allocation11 + $0x158] sm:$0xff] }
 0x34c   :  { %v985_v50 = vld [vmem:[#allocation11 + $0x178] sm:$0xff] }
 0x34e   :  { %2576 = vmatpush1.bf16.msra.mxu0 %v3921_v13  ;;  %2662 = vmatpush1.bf16.msra.mxu1 %v3923_v15  ;;  %v945_v13 = vld [vmem:[#allocation11 + $0x38] sm:$0xff]  ;;  %v3977_v15 = vcombine.low %v1186_v58, %v1190_v59  ;;  %v988_v58 = vld [vmem:[#allocation11 + $0x190] sm:$0xff] }
 0x34f   :  { %2577 = vmatprep.subr.bf16.mxu0 %v3930_v17  ;;  %2663 = vmatprep.subr.bf16.mxu1 %v3932_v18  ;;  %v3979_v17 = vcombine.low %v1187_v60, %v1191_v61  ;;  %v3734_v18 = vcombine.high %v940_v4, %v944_v5  ;;  %v3736_v19 = vcombine.high %v941_v9, %v945_v13  ;;  %v992_v59 = vld [vmem:[#allocation11 + $0x1b0] sm:$0xff]  ;;  %v989_v60 = vld [vmem:[#allocation11 + $0x198] sm:$0xff] }
 0x350   :  { %v993_v61 = vld [vmem:[#allocation11 + $0x1b8] sm:$0xff] }
 0x352   :  { %2578 = vmatpush1.bf16.msra.mxu0 %v3929_v7  ;;  %2664 = vmatpush1.bf16.msra.mxu1 %v3931_v8  ;;  %v953_v7 = vld [vmem:[#allocation11 + $0x78] sm:$0xff]  ;;  %v3733_v8 = vcombine.low %v940_v4, %v944_v5  ;;  %v996_v4 = vld [vmem:[#allocation11 + $0x1d0] sm:$0xff] }
 0x353   :  { %2579 = vmatprep.subr.bf16.mxu0 %v3938_v10  ;;  %2665 = vmatprep.subr.bf16.mxu1 %v3940_v11  ;;  %v3735_v10 = vcombine.low %v941_v9, %v945_v13  ;;  %v3742_v11 = vcombine.high %v948_v20, %v952_v21  ;;  %v3744_v12 = vcombine.high %v949_v6, %v953_v7  ;;  %v1000_v5 = vld [vmem:[#allocation11 + $0x1f0] sm:$0xff]  ;;  %v997_v9 = vld [vmem:[#allocation11 + $0x1d8] sm:$0xff] }
 0x354   :  { %v1001_v13 = vld [vmem:[#allocation11 + $0x1f8] sm:$0xff] }
 0x356   :  { %2580 = vmatpush1.bf16.msra.mxu0 %v3937_v25  ;;  %2666 = vmatpush1.bf16.msra.mxu1 %v3939_v26  ;;  %v961_v25 = vld [vmem:[#allocation11 + $0xb8] sm:$0xff]  ;;  %v3741_v26 = vcombine.low %v948_v20, %v952_v21  ;;  %v1004_v20 = vld [vmem:[#allocation11 + $0x210] sm:$0xff] }
 0x357   :  { %2581 = vmatprep.subr.bf16.mxu0 %v3946_v27  ;;  %2667 = vmatprep.subr.bf16.mxu1 %v3948_v28  ;;  %v3743_v27 = vcombine.low %v949_v6, %v953_v7  ;;  %v3750_v28 = vcombine.high %v956_v22, %v960_v23  ;;  %v3752_v29 = vcombine.high %v957_v24, %v961_v25  ;;  %v1008_v21 = vld [vmem:[#allocation11 + $0x230] sm:$0xff]  ;;  %v1005_v6 = vld [vmem:[#allocation11 + $0x218] sm:$0xff] }
 0x358   :  { %v1009_v7 = vld [vmem:[#allocation11 + $0x238] sm:$0xff] }
 0x35a   :  { %2582 = vmatpush1.bf16.msra.mxu0 %v3945_v33  ;;  %2668 = vmatpush1.bf16.msra.mxu1 %v3947_v34  ;;  %v969_v33 = vld [vmem:[#allocation11 + $0xf8] sm:$0xff]  ;;  %v3749_v34 = vcombine.low %v956_v22, %v960_v23  ;;  %v1012_v22 = vld [vmem:[#allocation11 + $0x250] sm:$0xff] }
 0x35b   :  { %2583 = vmatprep.subr.bf16.mxu0 %v3954_v35  ;;  %2669 = vmatprep.subr.bf16.mxu1 %v3956_v36  ;;  %v3751_v35 = vcombine.low %v957_v24, %v961_v25  ;;  %v3758_v36 = vcombine.high %v964_v30, %v968_v31  ;;  %v3760_v37 = vcombine.high %v965_v32, %v969_v33  ;;  %v1016_v23 = vld [vmem:[#allocation11 + $0x270] sm:$0xff]  ;;  %v1013_v24 = vld [vmem:[#allocation11 + $0x258] sm:$0xff] }
 0x35c   :  { %v1017_v25 = vld [vmem:[#allocation11 + $0x278] sm:$0xff] }
 0x35e   :  { %2584 = vmatpush1.bf16.msra.mxu0 %v3953_v41  ;;  %2670 = vmatpush1.bf16.msra.mxu1 %v3955_v42  ;;  %v3757_v41 = vcombine.low %v964_v30, %v968_v31  ;;  %v3759_v42 = vcombine.low %v965_v32, %v969_v33  ;;  %v1020_v30 = vld [vmem:[#allocation11 + $0x290] sm:$0xff]  ;;  %v1021_v32 = vld [vmem:[#allocation11 + $0x298] sm:$0xff] }
 0x35f   :  { %2585 = vmatprep.subr.bf16.mxu0 %v3962_v43  ;;  %2671 = vmatprep.subr.bf16.mxu1 %v3964_v44  ;;  %v3766_v43 = vcombine.high %v972_v38, %v976_v39  ;;  %v1024_v31 = vld [vmem:[#allocation11 + $0x2b0] sm:$0xff]  ;;  %v1025_v33 = vld [vmem:[#allocation11 + $0x2b8] sm:$0xff] }
 0x362   :  { %2586 = vmatpush1.bf16.msra.mxu0 %v3961_v52  ;;  %2672 = vmatpush1.bf16.msra.mxu1 %v3963_v53  ;;  %v3765_v52 = vcombine.low %v972_v38, %v976_v39  ;;  %v1028_v38 = vld [vmem:[#allocation11 + $0x2d0] sm:$0xff] }
 0x363   :  { %2587 = vmatprep.subr.bf16.mxu0 %v3970_v54  ;;  %2673 = vmatprep.subr.bf16.mxu1 %v3972_v57  ;;  %v3774_v54 = vcombine.high %v980_v45, %v984_v46  ;;  %v3776_v57 = vcombine.high %v981_v47, %v985_v50  ;;  %v1032_v39 = vld [vmem:[#allocation11 + $0x2f0] sm:$0xff] }
 0x366   :  { %2588 = vmatpush1.bf16.msra.mxu0 %v3969_v0  ;;  %2674 = vmatpush1.bf16.msra.mxu1 %v3971_v1  ;;  %v3773_v0 = vcombine.low %v980_v45, %v984_v46  ;;  %v3775_v1 = vcombine.low %v981_v47, %v985_v50  ;;  %v1036_v45 = vld [vmem:[#allocation11 + $0x310] sm:$0xff]  ;;  %v1037_v47 = vld [vmem:[#allocation11 + $0x318] sm:$0xff] }
 0x367   :  { %2589 = vmatprep.subr.bf16.mxu0 %v3978_v2  ;;  %2675 = vmatprep.subr.bf16.mxu1 %v3980_v3  ;;  %v3782_v2 = vcombine.high %v988_v58, %v992_v59  ;;  %v3784_v3 = vcombine.high %v989_v60, %v993_v61  ;;  %v1040_v46 = vld [vmem:[#allocation11 + $0x330] sm:$0xff]  ;;  %v1041_v50 = vld [vmem:[#allocation11 + $0x338] sm:$0xff] }
 0x36a   :  { %2590 = vmatpush1.bf16.msra.mxu0 %v3977_v15  ;;  %2676 = vmatpush1.bf16.msra.mxu1 %v3979_v17  ;;  %v3781_v15 = vcombine.low %v988_v58, %v992_v59  ;;  %v3783_v17 = vcombine.low %v989_v60, %v993_v61  ;;  %v1044_v58 = vld [vmem:[#allocation11 + $0x350] sm:$0xff]  ;;  %v1045_v60 = vld [vmem:[#allocation11 + $0x358] sm:$0xff] }
 0x36b   :  { %2688 = vmatprep.subr.bf16.mxu0 %v3734_v18  ;;  %2774 = vmatprep.subr.bf16.mxu1 %v3736_v19  ;;  %v3790_v18 = vcombine.high %v996_v4, %v1000_v5  ;;  %v3792_v19 = vcombine.high %v997_v9, %v1001_v13  ;;  %v1048_v59 = vld [vmem:[#allocation11 + $0x370] sm:$0xff]  ;;  %v1049_v61 = vld [vmem:[#allocation11 + $0x378] sm:$0xff] }
 0x36d   :  { %2592 = vmatmul.mubr.bf16.vlgmr.msra.gmra.mrb[8].mxu0 %v4801_v56  ;;  %2678 = vmatmul.mubr.bf16.vlgmr.msra.gmra.mrb[8].mxu1 %v4801_v56 }
 0x36e   :  { %2689 = vmatpush1.bf16.msra.mxu0 %v3733_v8  ;;  %2720 = vmatprep.mubr.bf16.mxu0 %v4803_v62  ;;  %v3789_v8 = vcombine.low %v996_v4, %v1000_v5  ;;  %v1052_v4 = vld [vmem:[#allocation11 + $0x390] sm:$0xff] }
 0x36f   :  { %2775 = vmatpush1.bf16.msra.mxu1 %v3735_v10  ;;  %2806 = vmatprep.mubr.bf16.mxu1 %v4803_v62  ;;  %v973_v62 = vld [vmem:[#allocation11 + $0x118] sm:$0xff]  ;;  %v3791_v10 = vcombine.low %v997_v9, %v1001_v13  ;;  %v1056_v5 = vld [vmem:[#allocation11 + $0x3b0] sm:$0xff] }
 0x370   :  { %2690 = vmatprep.subr.bf16.mxu0 %v3742_v11  ;;  %2776 = vmatprep.subr.bf16.mxu1 %v3744_v12  ;;  %v3768_v44 = vcombine.high %v973_v62, %v977_v40  ;;  %v3767_v53 = vcombine.low %v973_v62, %v977_v40  ;;  %v3798_v11 = vcombine.high %v1004_v20, %v1008_v21  ;;  %v1029_v62 = vld [vmem:[#allocation11 + $0x2d8] sm:$0xff] }
 0x371   :  { %v3800_v12 = vcombine.high %v1005_v6, %v1009_v7  ;;  %v1033_v40 = vld [vmem:[#allocation11 + $0x2f8] sm:$0xff] }
 0x372   :  { %2691 = vmatpush1.bf16.msra.mxu0 %v3741_v26  ;;  %v3797_v26 = vcombine.low %v1004_v20, %v1008_v21  ;;  %v1053_v9 = vld [vmem:[#allocation11 + $0x398] sm:$0xff]  ;;  %v1060_v20 = vld [vmem:[#allocation11 + $0x3d0] sm:$0xff] }
 0x373   :  { %2777 = vmatpush1.bf16.msra.mxu1 %v3743_v27  ;;  %2692 = vmatprep.subr.bf16.mxu0 %v3750_v28  ;;  %v3799_v27 = vcombine.low %v1005_v6, %v1009_v7  ;;  %v3806_v28 = vcombine.high %v1012_v22, %v1016_v23  ;;  %v1057_v13 = vld [vmem:[#allocation11 + $0x3b8] sm:$0xff]  ;;  %v1064_v21 = vld [vmem:[#allocation11 + $0x3f0] sm:$0xff] }
 0x374   :  { %2778 = vmatprep.subr.bf16.mxu1 %v3752_v29  ;;  %v3808_v29 = vcombine.high %v1013_v24, %v1017_v25  ;;  %v1061_v6 = vld [vmem:[#allocation11 + $0x3d8] sm:$0xff] }
 0x375   :  { %v1065_v7 = vld [vmem:[#allocation11 + $0x3f8] sm:$0xff] }
 0x376   :  { %2693 = vmatpush1.bf16.msra.mxu0 %v3749_v34  ;;  %v3805_v34 = vcombine.low %v1012_v22, %v1016_v23  ;;  %v1068_v22 = vld [vmem:[#allocation11 + $0x410] sm:$0xff] }
 0x377   :  { %2779 = vmatpush1.bf16.msra.mxu1 %v3751_v35  ;;  %2694 = vmatprep.subr.bf16.mxu0 %v3758_v36  ;;  %v3807_v35 = vcombine.low %v1013_v24, %v1017_v25  ;;  %v3814_v36 = vcombine.high %v1020_v30, %v1024_v31  ;;  %v1072_v23 = vld [vmem:[#allocation11 + $0x430] sm:$0xff]  ;;  %v1069_v24 = vld [vmem:[#allocation11 + $0x418] sm:$0xff] }
 0x378   :  { %2780 = vmatprep.subr.bf16.mxu1 %v3760_v37  ;;  %v3816_v37 = vcombine.high %v1021_v32, %v1025_v33  ;;  %v1073_v25 = vld [vmem:[#allocation11 + $0x438] sm:$0xff] }
 0x37a   :  { %2695 = vmatpush1.bf16.msra.mxu0 %v3757_v41  ;;  %v3813_v41 = vcombine.low %v1020_v30, %v1024_v31  ;;  %v1076_v30 = vld [vmem:[#allocation11 + $0x450] sm:$0xff] }
 0x37b   :  { %2781 = vmatpush1.bf16.msra.mxu1 %v3759_v42  ;;  %2696 = vmatprep.subr.bf16.mxu0 %v3766_v43  ;;  %v3815_v42 = vcombine.low %v1021_v32, %v1025_v33  ;;  %v3822_v43 = vcombine.high %v1028_v38, %v1032_v39  ;;  %v1080_v31 = vld [vmem:[#allocation11 + $0x470] sm:$0xff]  ;;  %v3861_v32 = vcombine.low %v1068_v22, %v1072_v23  ;;  %v1077_v33 = vld [vmem:[#allocation11 + $0x458] sm:$0xff] }
 0x37c   :  { %2782 = vmatprep.subr.bf16.mxu1 %v3768_v44  ;;  %v3824_v44 = vcombine.high %v1029_v62, %v1033_v40 }
 0x37e   :  { %2697 = vmatpush1.bf16.msra.mxu0 %v3765_v52  ;;  %v3821_v52 = vcombine.low %v1028_v38, %v1032_v39  ;;  %v1088_v38 = vld [vmem:[#allocation11 + $0x4b0] sm:$0xff] }
 0x37f   :  { %2783 = vmatpush1.bf16.msra.mxu1 %v3767_v53  ;;  %2698 = vmatprep.subr.bf16.mxu0 %v3774_v54  ;;  %v3823_v53 = vcombine.low %v1029_v62, %v1033_v40  ;;  %v3830_v54 = vcombine.high %v1036_v45, %v1040_v46  ;;  %v1085_v62 = vld [vmem:[#allocation11 + $0x498] sm:$0xff] }
 0x380   :  { %2784 = vmatprep.subr.bf16.mxu1 %v3776_v57  ;;  %v3832_v57 = vcombine.high %v1037_v47, %v1041_v50  ;;  %v1089_v40 = vld [vmem:[#allocation11 + $0x4b8] sm:$0xff] }
 0x382   :  { %2699 = vmatpush1.bf16.msra.mxu0 %v3773_v0  ;;  %v3829_v0 = vcombine.low %v1036_v45, %v1040_v46  ;;  %v1092_v45 = vld [vmem:[#allocation11 + $0x4d0] sm:$0xff] }
 0x383   :  { %2785 = vmatpush1.bf16.msra.mxu1 %v3775_v1  ;;  %2700 = vmatprep.subr.bf16.mxu0 %v3782_v2  ;;  %v3831_v1 = vcombine.low %v1037_v47, %v1041_v50  ;;  %v3838_v2 = vcombine.high %v1044_v58, %v1048_v59  ;;  %v1096_v46 = vld [vmem:[#allocation11 + $0x4f0] sm:$0xff]  ;;  %v1093_v47 = vld [vmem:[#allocation11 + $0x4d8] sm:$0xff] }
 0x384   :  { %2786 = vmatprep.subr.bf16.mxu1 %v3784_v3  ;;  %v3840_v3 = vcombine.high %v1045_v60, %v1049_v61  ;;  %v1097_v50 = vld [vmem:[#allocation11 + $0x4f8] sm:$0xff] }
 0x386   :  { %2701 = vmatpush1.bf16.msra.mxu0 %v3781_v15  ;;  %v3837_v15 = vcombine.low %v1044_v58, %v1048_v59  ;;  %v1104_v58 = vld [vmem:[#allocation11 + $0x530] sm:$0xff]  ;;  %v1101_v59 = vld [vmem:[#allocation11 + $0x518] sm:$0xff] }
 0x387   :  { %2787 = vmatpush1.bf16.msra.mxu1 %v3783_v17  ;;  %2702 = vmatprep.subr.bf16.mxu0 %v3790_v18  ;;  %v3839_v17 = vcombine.low %v1045_v60, %v1049_v61  ;;  %v3846_v18 = vcombine.high %v1052_v4, %v1056_v5  ;;  %v1105_v60 = vld [vmem:[#allocation11 + $0x538] sm:$0xff]  ;;  %v3887_v61 = vcombine.low %v1093_v47, %v1097_v50 }
 0x388   :  { %2788 = vmatprep.subr.bf16.mxu1 %v3792_v19  ;;  %v3848_v19 = vcombine.high %v1053_v9, %v1057_v13 }
 0x38a   :  { %2703 = vmatpush1.bf16.msra.mxu0 %v3789_v8  ;;  %v3845_v8 = vcombine.low %v1052_v4, %v1056_v5  ;;  %v1109_v4 = vld [vmem:[#allocation11 + $0x558] sm:$0xff] }
 0x38b   :  { %2789 = vmatpush1.bf16.msra.mxu1 %v3791_v10  ;;  %2704 = vmatprep.subr.bf16.mxu0 %v3798_v11  ;;  %v3847_v10 = vcombine.low %v1053_v9, %v1057_v13  ;;  %v3854_v11 = vcombine.high %v1060_v20, %v1064_v21  ;;  %v1113_v5 = vld [vmem:[#allocation11 + $0x578] sm:$0xff]  ;;  %v3895_v13 = vcombine.low %v1101_v59, %v1105_v60 }
 0x38c   :  { %2790 = vmatprep.subr.bf16.mxu1 %v3800_v12  ;;  %v3856_v12 = vcombine.high %v1061_v6, %v1065_v7 }
 0x38e   :  { %2705 = vmatpush1.bf16.msra.mxu0 %v3797_v26  ;;  %v3853_v26 = vcombine.low %v1060_v20, %v1064_v21  ;;  %v1117_v20 = vld [vmem:[#allocation11 + $0x598] sm:$0xff] }
 0x38f   :  { %2791 = vmatpush1.bf16.msra.mxu1 %v3799_v27  ;;  %2706 = vmatprep.subr.bf16.mxu0 %v3806_v28  ;;  %v3855_v27 = vcombine.low %v1061_v6, %v1065_v7  ;;  %v3862_v28 = vcombine.high %v1068_v22, %v1072_v23  ;;  %v1121_v21 = vld [vmem:[#allocation11 + $0x5b8] sm:$0xff]  ;;  %v3903_v7 = vcombine.low %v1109_v4, %v1113_v5 }
 0x390   :  { %2792 = vmatprep.subr.bf16.mxu1 %v3808_v29  ;;  %v3864_v29 = vcombine.high %v1069_v24, %v1073_v25  ;;  %v1125_v22 = vld [vmem:[#allocation11 + $0x5d8] sm:$0xff] }
 0x391   :  { %v1129_v23 = vld [vmem:[#allocation11 + $0x5f8] sm:$0xff] }
 0x392   :  { %2707 = vmatpush1.bf16.msra.mxu0 %v3805_v34  ;;  %v1081_v34 = vld [vmem:[#allocation11 + $0x478] sm:$0xff] }
 0x393   :  { %2793 = vmatpush1.bf16.msra.mxu1 %v3807_v35  ;;  %2708 = vmatprep.subr.bf16.mxu0 %v3814_v36  ;;  %v3863_v35 = vcombine.low %v1069_v24, %v1073_v25  ;;  %v3870_v36 = vcombine.high %v1076_v30, %v1080_v31  ;;  %v3872_v39 = vcombine.high %v1077_v33, %v1081_v34 }
 0x394   :  { %2794 = vmatprep.subr.bf16.mxu1 %v3816_v37  ;;  %v1084_v37 = vld [vmem:[#allocation11 + $0x490] sm:$0xff]  ;;  %v3911_v25 = vcombine.low %v1117_v20, %v1121_v21 }
 0x396   :  { %2709 = vmatpush1.bf16.msra.mxu0 %v3813_v41  ;;  %v3869_v41 = vcombine.low %v1076_v30, %v1080_v31  ;;  %v1133_v30 = vld [vmem:[#allocation11 + $0x618] sm:$0xff] }
 0x397   :  { %2795 = vmatpush1.bf16.msra.mxu1 %v3815_v42  ;;  %2710 = vmatprep.subr.bf16.mxu0 %v3822_v43  ;;  %v3871_v42 = vcombine.low %v1077_v33, %v1081_v34  ;;  %v3878_v43 = vcombine.high %v1084_v37, %v1088_v38  ;;  %v1137_v31 = vld [vmem:[#allocation11 + $0x638] sm:$0xff]  ;;  %v3919_v33 = vcombine.low %v1125_v22, %v1129_v23 }
 0x398   :  { %2796 = vmatprep.subr.bf16.mxu1 %v3824_v44  ;;  %v3880_v44 = vcombine.high %v1085_v62, %v1089_v40 }
 0x39a   :  { %2711 = vmatpush1.bf16.msra.mxu0 %v3821_v52  ;;  %v3877_v52 = vcombine.low %v1084_v37, %v1088_v38  ;;  %v1144_v37 = vld [vmem:[#allocation11 + $0x670] sm:$0xff]  ;;  %v1141_v38 = vld [vmem:[#allocation11 + $0x658] sm:$0xff] }
 0x39b   :  { %2797 = vmatpush1.bf16.msra.mxu1 %v3823_v53  ;;  %2712 = vmatprep.subr.bf16.mxu0 %v3830_v54  ;;  %v3886_v53 = vcombine.high %v1092_v45, %v1096_v46  ;;  %v3888_v54 = vcombine.high %v1093_v47, %v1097_v50 }
 0x39c   :  { %2798 = vmatprep.subr.bf16.mxu1 %v3832_v57  ;;  %v1100_v57 = vld [vmem:[#allocation11 + $0x510] sm:$0xff] }
 0x39d   :  { %v3893_v9 = vcombine.low %v1100_v57, %v1104_v58 }
 0x39e   :  { %2713 = vmatpush1.bf16.msra.mxu0 %v3829_v0  ;;  %v3894_v0 = vcombine.high %v1100_v57, %v1104_v58  ;;  %v1157_v57 = vld [vmem:[#allocation11 + $0x6d8] sm:$0xff] }
 0x39f   :  { %2799 = vmatpush1.bf16.msra.mxu1 %v3831_v1  ;;  %2714 = vmatprep.subr.bf16.mxu0 %v3838_v2  ;;  %v3896_v1 = vcombine.high %v1101_v59, %v1105_v60  ;;  %v1108_v2 = vld [vmem:[#allocation11 + $0x550] sm:$0xff]  ;;  %v1161_v58 = vld [vmem:[#allocation11 + $0x6f8] sm:$0xff] }
 0x3a0   :  { %2800 = vmatprep.subr.bf16.mxu1 %v3840_v3  ;;  %v1112_v3 = vld [vmem:[#allocation11 + $0x570] sm:$0xff] }
 0x3a1   :  { %v3901_v6 = vcombine.low %v1108_v2, %v1112_v3 }
 0x3a2   :  { %2715 = vmatpush1.bf16.msra.mxu0 %v3837_v15  ;;  %v3902_v15 = vcombine.high %v1108_v2, %v1112_v3  ;;  %v1165_v2 = vld [vmem:[#allocation11 + $0x718] sm:$0xff] }
 0x3a3   :  { %2801 = vmatpush1.bf16.msra.mxu1 %v3839_v17  ;;  %2716 = vmatprep.subr.bf16.mxu0 %v3846_v18  ;;  %v3904_v17 = vcombine.high %v1109_v4, %v1113_v5  ;;  %v1116_v18 = vld [vmem:[#allocation11 + $0x590] sm:$0xff]  ;;  %v1169_v3 = vld [vmem:[#allocation11 + $0x738] sm:$0xff]  ;;  %v3951_v5 = vcombine.low %v1157_v57, %v1161_v58 }
 0x3a4   :  { %2802 = vmatprep.subr.bf16.mxu1 %v3848_v19  ;;  %v1120_v19 = vld [vmem:[#allocation11 + $0x5b0] sm:$0xff] }
 0x3a5   :  { %v3909_v24 = vcombine.low %v1116_v18, %v1120_v19 }
 0x3a6   :  { %2717 = vmatpush1.bf16.msra.mxu0 %v3845_v8  ;;  %v3910_v8 = vcombine.high %v1116_v18, %v1120_v19  ;;  %v1173_v18 = vld [vmem:[#allocation11 + $0x758] sm:$0xff] }
 0x3a7   :  { %2803 = vmatpush1.bf16.msra.mxu1 %v3847_v10  ;;  %2718 = vmatprep.subr.bf16.mxu0 %v3854_v11  ;;  %v3912_v10 = vcombine.high %v1117_v20, %v1121_v21  ;;  %v1124_v11 = vld [vmem:[#allocation11 + $0x5d0] sm:$0xff]  ;;  %v1177_v19 = vld [vmem:[#allocation11 + $0x778] sm:$0xff]  ;;  %v3959_v21 = vcombine.low %v1165_v2, %v1169_v3 }
 0x3a8   :  { %2804 = vmatprep.subr.bf16.mxu1 %v3856_v12  ;;  %v1128_v12 = vld [vmem:[#allocation11 + $0x5f0] sm:$0xff] }
 0x3aa   :  { %2719 = vmatpush1.bf16.msra.mxu0 %v3853_v26  ;;  %v3918_v26 = vcombine.high %v1124_v11, %v1128_v12 }
 0x3ab   :  { %2805 = vmatpush1.bf16.msra.mxu1 %v3855_v27  ;;  %2731 = vmatprep.subr.bf16.mxu0 %v3862_v28  ;;  %v3920_v27 = vcombine.high %v1125_v22, %v1129_v23  ;;  %v1132_v28 = vld [vmem:[#allocation11 + $0x610] sm:$0xff]  ;;  %v3967_v23 = vcombine.low %v1173_v18, %v1177_v19 }
 0x3ac   :  { %2817 = vmatprep.subr.bf16.mxu1 %v3864_v29  ;;  %v1136_v29 = vld [vmem:[#allocation11 + $0x630] sm:$0xff] }
 0x3ad   :  { %2721 = vmatmul.mubr.bf16.vlgmr.msra.gmra.mrb[12].mxu0 %v4799_v55  ;;  %v3926_v34 = vcombine.high %v1132_v28, %v1136_v29 }
 0x3ae   :  { %2807 = vmatmul.mubr.bf16.vlgmr.msra.gmra.mrb[12].mxu1 %v4799_v55  ;;  %2732 = vmatpush1.bf16.msra.mxu0 %v3861_v32  ;;  %v3879_v55 = vcombine.low %v1085_v62, %v1089_v40  ;;  %v3917_v32 = vcombine.low %v1124_v11, %v1128_v12  ;;  %v3925_v62 = vcombine.low %v1132_v28, %v1136_v29  ;;  %v1181_v11 = vld [vmem:[#allocation11 + $0x798] sm:$0xff] }
 0x3af   :  { %2763 = vmatprep.mubr.bf16.mxu0 %v4805_v63  ;;  %2818 = vmatpush1.bf16.msra.mxu1 %v3863_v35  ;;  %v3928_v35 = vcombine.high %v1133_v30, %v1137_v31  ;;  %v3927_v40 = vcombine.low %v1133_v30, %v1137_v31  ;;  %v1185_v12 = vld [vmem:[#allocation11 + $0x7b8] sm:$0xff] }
 0x3b0   :  { %2849 = vmatprep.mubr.bf16.mxu1 %v4805_v63  ;;  %2733 = vmatprep.subr.bf16.mxu0 %v3870_v36  ;;  %v3885_v63 = vcombine.low %v1092_v45, %v1096_v46  ;;  %v1140_v36 = vld [vmem:[#allocation11 + $0x650] sm:$0xff]  ;;  %v1149_v45 = vld [vmem:[#allocation11 + $0x698] sm:$0xff]  ;;  %v3975_v31 = vcombine.low %v1181_v11, %v1185_v12 }
 0x3b1   :  { %2819 = vmatprep.subr.bf16.mxu1 %v3872_v39  ;;  %v1145_v39 = vld [vmem:[#allocation11 + $0x678] sm:$0xff]  ;;  %v3933_v47 = vcombine.low %v1140_v36, %v1144_v37 }
 0x3b2   :  { %2734 = vmatpush1.bf16.msra.mxu0 %v3869_v41  ;;  %v3934_v41 = vcombine.high %v1140_v36, %v1144_v37  ;;  %v1153_v46 = vld [vmem:[#allocation11 + $0x6b8] sm:$0xff]  ;;  %v3935_v50 = vcombine.low %v1141_v38, %v1145_v39  ;;  %v4346_v36 = vld [vmem:[#allocation12 + $0x40] sm:$0xff]  }
 0x3b3   :  { %2820 = vmatpush1.bf16.msra.mxu1 %v3871_v42  ;;  %2735 = vmatprep.subr.bf16.mxu0 %v3878_v43  ;;  %v3936_v42 = vcombine.high %v1141_v38, %v1145_v39  ;;  %v1148_v43 = vld [vmem:[#allocation11 + $0x690] sm:$0xff]  ;;  %v3943_v60 = vcombine.low %v1149_v45, %v1153_v46  ;;  %v1189_v28 = vld [vmem:[#allocation11 + $0x7d8] sm:$0xff]  ;;  %v4347_v37 = vld [vmem:[#allocation12 + $0xc0] sm:$0xff]  }
 0x3b4   :  { %2821 = vmatprep.subr.bf16.mxu1 %v3880_v44  ;;  %v1152_v44 = vld [vmem:[#allocation11 + $0x6b0] sm:$0xff]  ;;  %v1193_v29 = vld [vmem:[#allocation11 + $0x7f8] sm:$0xff]  ;;  %v4348_v38 = vld [vmem:[#allocation12] sm:$0xff]  }
 0x3b5   :  { %v3941_v59 = vcombine.low %v1148_v43, %v1152_v44  ;;  %v4349_v39 = vld [vmem:[#allocation12 + $0x80] sm:$0xff]  }
 0x3b6   :  { %2736 = vmatpush1.bf16.msra.mxu0 %v3877_v52  ;;  %v3942_v52 = vcombine.high %v1148_v43, %v1152_v44  ;;  %v4354_v43 = vld [vmem:[#allocation12 + $0x50] sm:$0xff]  }
 0x3b7   :  { %2822 = vmatpush1.bf16.msra.mxu1 %v3879_v55  ;;  %2737 = vmatprep.subr.bf16.mxu0 %v3886_v53  ;;  %v3944_v55 = vcombine.high %v1149_v45, %v1153_v46  ;;  %v1156_v53 = vld [vmem:[#allocation11 + $0x6d0] sm:$0xff] }
 0x3b8   :  { %2823 = vmatprep.subr.bf16.mxu1 %v3888_v54  ;;  %v1160_v54 = vld [vmem:[#allocation11 + $0x6f0] sm:$0xff] }
 0x3b9   :  { %v3949_v4 = vcombine.low %v1156_v53, %v1160_v54  ;;  %v4355_v44 = vld [vmem:[#allocation12 + $0xd0] sm:$0xff]  }
 0x3ba   :  { %2738 = vmatpush1.bf16.msra.mxu0 %v3885_v63  ;;  %v3950_v63 = vcombine.high %v1156_v53, %v1160_v54  ;;  %v4356_v45 = vld [vmem:[#allocation12 + $0x10] sm:$0xff]   ;;  %v4363_v53 = vld [vmem:[#allocation12 + $0xe0] sm:$0xff]  }
 0x3bb   :  { %2824 = vmatpush1.bf16.msra.mxu1 %v3887_v61  ;;  %2739 = vmatprep.subr.bf16.mxu0 %v3894_v0  ;;  %v3952_v61 = vcombine.high %v1157_v57, %v1161_v58  ;;  %v1164_v0 = vld [vmem:[#allocation11 + $0x710] sm:$0xff]  ;;  %v4364_v54 = vld [vmem:[#allocation12 + $0x20] sm:$0xff]   ;;  %v4366_v58 = vld [vmem:[#allocation12 + $0x68] sm:$0xff]  }
 0x3bc   :  { %2825 = vmatprep.subr.bf16.mxu1 %v3896_v1  ;;  %v1168_v1 = vld [vmem:[#allocation11 + $0x730] sm:$0xff]  ;;  %v4365_v57 = vld [vmem:[#allocation12 + $0xa0] sm:$0xff]  }
 0x3bd   :  { %v3957_v20 = vcombine.low %v1164_v0, %v1168_v1  ;;  %v4357_v46 = vld [vmem:[#allocation12 + $0x90] sm:$0xff]  }
 0x3be   :  { %2740 = vmatpush1.bf16.msra.mxu0 %v3893_v9  ;;  %v3958_v9 = vcombine.high %v1164_v0, %v1168_v1  ;;  %v4371_v0 = vld [vmem:[#allocation12 + $0xf0] sm:$0xff]  }
 0x3bf   :  { %2826 = vmatpush1.bf16.msra.mxu1 %v3895_v13  ;;  %2741 = vmatprep.subr.bf16.mxu0 %v3902_v15  ;;  %v3960_v13 = vcombine.high %v1165_v2, %v1169_v3  ;;  %v1172_v15 = vld [vmem:[#allocation11 + $0x750] sm:$0xff]  ;;  %v4374_v3 = vld [vmem:[#allocation12 + $0x78] sm:$0xff]  }
 0x3c0   :  { %2827 = vmatprep.subr.bf16.mxu1 %v3904_v17  ;;  %v1176_v17 = vld [vmem:[#allocation11 + $0x770] sm:$0xff] }
 0x3c1   :  { %v3965_v22 = vcombine.low %v1172_v15, %v1176_v17  ;;  %v4372_v1 = vld [vmem:[#allocation12 + $0x30] sm:$0xff]  }
 0x3c2   :  { %2742 = vmatpush1.bf16.msra.mxu0 %v3901_v6  ;;  %v3966_v6 = vcombine.high %v1172_v15, %v1176_v17  ;;  %v4373_v2 = vld [vmem:[#allocation12 + $0xb0] sm:$0xff]   ;;  %v4379_v15 = vld [vmem:[#allocation12 + $0x1c0] sm:$0xff]   ;;  %v4832_v17 = vld [vmem:[%s4883_s8] sm:$0xff] }
 0x3c3   :  { %2828 = vmatpush1.bf16.msra.mxu1 %v3903_v7  ;;  %2743 = vmatprep.subr.bf16.mxu0 %v3910_v8  ;;  %v3968_v7 = vcombine.high %v1173_v18, %v1177_v19  ;;  %v1180_v8 = vld [vmem:[#allocation11 + $0x790] sm:$0xff]  ;;  %v1199_v18 = vrot.slane %v4832_v17, %v4760_v49  ;;  %v1207_v19 = vrot.slane %v4832_v17, %v494_v14 }
 0x3c4   :  { %2829 = vmatprep.subr.bf16.mxu1 %v3912_v10  ;;  %v1184_v10 = vld [vmem:[#allocation11 + $0x7b0] sm:$0xff] }
 0x3c5   :  { %v3973_v30 = vcombine.low %v1180_v8, %v1184_v10 }
 0x3c6   :  { %2744 = vmatpush1.bf16.msra.mxu0 %v3909_v24  ;;  %v3974_v24 = vcombine.high %v1180_v8, %v1184_v10 }
 0x3c7   :  { %2830 = vmatpush1.bf16.msra.mxu1 %v3911_v25  ;;  %2745 = vmatprep.subr.bf16.mxu0 %v3918_v26  ;;  %v3976_v25 = vcombine.high %v1181_v11, %v1185_v12  ;;  %v1188_v26 = vld [vmem:[#allocation11 + $0x7d0] sm:$0xff] }
 0x3c8   :  { %2831 = vmatprep.subr.bf16.mxu1 %v3920_v27  ;;  %v1192_v27 = vld [vmem:[#allocation11 + $0x7f0] sm:$0xff] }
 0x3ca   :  { %2746 = vmatpush1.bf16.msra.mxu0 %v3917_v32  ;;  %v3982_v32 = vcombine.high %v1188_v26, %v1192_v27 }
 0x3cb   :  { %2832 = vmatpush1.bf16.msra.mxu1 %v3919_v33  ;;  %2747 = vmatprep.subr.bf16.mxu0 %v3926_v34  ;;  %v3984_v33 = vcombine.high %v1189_v28, %v1193_v29  ;;  %v3981_v34 = vcombine.low %v1188_v26, %v1192_v27 }
 0x3cc   :  { %2833 = vmatprep.subr.bf16.mxu1 %v3928_v35  ;;  %v3983_v35 = vcombine.low %v1189_v28, %v1193_v29 }
 0x3ce   :  { %2748 = vmatpush1.bf16.msra.mxu0 %v3925_v62  ;;  %v4350_v62 = vld [vmem:[#allocation12 + $0x48] sm:$0xff]  }
 0x3cf   :  { %2834 = vmatpush1.bf16.msra.mxu1 %v3927_v40  ;;  %2749 = vmatprep.subr.bf16.mxu0 %v3934_v41  ;;  %v4351_v40 = vld [vmem:[#allocation12 + $0xc8] sm:$0xff]  }
 0x3d0   :  { %2835 = vmatprep.subr.bf16.mxu1 %v3936_v42  ;;  %v4352_v41 = vld [vmem:[#allocation12 + $0x8] sm:$0xff]  }
 0x3d1   :  { %v4353_v42 = vld [vmem:[#allocation12 + $0x88] sm:$0xff]  }
 0x3d2   :  { %2750 = vmatpush1.bf16.msra.mxu0 %v3933_v47  ;;  %v4358_v47 = vld [vmem:[#allocation12 + $0x58] sm:$0xff]  }
 0x3d3   :  { %2836 = vmatpush1.bf16.msra.mxu1 %v3935_v50  ;;  %2751 = vmatprep.subr.bf16.mxu0 %v3942_v52  ;;  %v4359_v50 = vld [vmem:[#allocation12 + $0xd8] sm:$0xff]  }
 0x3d4   :  { %2837 = vmatprep.subr.bf16.mxu1 %v3944_v55  ;;  %v4360_v52 = vld [vmem:[#allocation12 + $0x18] sm:$0xff]   ;;  %v4362_v55 = vld [vmem:[#allocation12 + $0x60] sm:$0xff]  }
 0x3d6   :  { %2752 = vmatpush1.bf16.msra.mxu0 %v3941_v59  ;;  %v4367_v59 = vld [vmem:[#allocation12 + $0xe8] sm:$0xff]  }
 0x3d7   :  { %2838 = vmatpush1.bf16.msra.mxu1 %v3943_v60  ;;  %2753 = vmatprep.subr.bf16.mxu0 %v3950_v63  ;;  %v4368_v60 = vld [vmem:[#allocation12 + $0x28] sm:$0xff]  }
 0x3d8   :  { %2839 = vmatprep.subr.bf16.mxu1 %v3952_v61  ;;  %v4369_v63 = vld [vmem:[#allocation12 + $0xa8] sm:$0xff]   ;;  %v4370_v61 = vld [vmem:[#allocation12 + $0x70] sm:$0xff]  }
 0x3da   :  { %2754 = vmatpush1.bf16.msra.mxu0 %v3949_v4  ;;  %v4375_v4 = vld [vmem:[#allocation12 + $0xf8] sm:$0xff]  }
 0x3db   :  { %2840 = vmatpush1.bf16.msra.mxu1 %v3951_v5  ;;  %2755 = vmatprep.subr.bf16.mxu0 %v3958_v9  ;;  %v4376_v5 = vld [vmem:[#allocation12 + $0x38] sm:$0xff]  }
 0x3dc   :  { %2841 = vmatprep.subr.bf16.mxu1 %v3960_v13  ;;  %v4377_v9 = vld [vmem:[#allocation12 + $0xb8] sm:$0xff]   ;;  %v4378_v13 = vld [vmem:[#allocation12 + $0x140] sm:$0xff]  }
 0x3de   :  { %2756 = vmatpush1.bf16.msra.mxu0 %v3957_v20  ;;  %v1203_v20 = vrot.slane %v4832_v17, %v4766_v51 }
 0x3df   :  { %2842 = vmatpush1.bf16.msra.mxu1 %v3959_v21  ;;  %2757 = vmatprep.subr.bf16.mxu0 %v3966_v6  ;;  %v1211_v21 = vrot.slane %v4832_v17, %v498_v16 }
 0x3e0   :  { %2843 = vmatprep.subr.bf16.mxu1 %v3968_v7 }
 0x3e2   :  { %2758 = vmatpush1.bf16.msra.mxu0 %v3965_v22 }
 0x3e3   :  { %2844 = vmatpush1.bf16.msra.mxu1 %v3967_v23  ;;  %2759 = vmatprep.subr.bf16.mxu0 %v3974_v24 }
 0x3e4   :  { %2845 = vmatprep.subr.bf16.mxu1 %v3976_v25 }
 0x3e6   :  { %2760 = vmatpush1.bf16.msra.mxu0 %v3973_v30 }
 0x3e7   :  { %2846 = vmatpush1.bf16.msra.mxu1 %v3975_v31  ;;  %2761 = vmatprep.subr.bf16.mxu0 %v3982_v32 }
 0x3e8   :  { %2847 = vmatprep.subr.bf16.mxu1 %v3984_v33 }
 0x3ea   :  { %2762 = vmatpush1.bf16.msra.mxu0 %v3981_v34 }
 0x3eb   :  { %2848 = vmatpush1.bf16.msra.mxu1 %v3983_v35  ;;  %4059 = vmatprep.subr.bf16.mxu0 %v4346_v36 }
 0x3ec   :  { %4081 = vmatprep.subr.bf16.mxu1 %v4347_v37 }
 0x3ed   :  { %2764 = vmatmul.mubr.bf16.vlgmr.msra.gmra.mrb[12].mxu0 %v4801_v56 }
 0x3ee   :  { %2850 = vmatmul.mubr.bf16.vlgmr.msra.gmra.mrb[12].mxu1 %v4801_v56  ;;  %4060 = vmatpush3.bf16.msra.mxu0 %v4348_v38  ;;  %v4361_v56 = vld [vmem:[#allocation12 + $0x98] sm:$0xff]  }
 0x3ef   :  { %4082 = vmatpush3.bf16.msra.mxu1 %v4349_v39  ;;  %4061 = vmatprep.subr.bf16.mxu0 %v4350_v62 }
 0x3f0   :  { %4083 = vmatprep.subr.bf16.mxu1 %v4351_v40 }
 0x3f2   :  { %4062 = vmatpush3.bf16.msra.mxu0 %v4352_v41 }
 0x3f3   :  { %4084 = vmatpush3.bf16.msra.mxu1 %v4353_v42  ;;  %4063 = vmatprep.subr.bf16.mxu0 %v4354_v43 }
 0x3f4   :  { %4085 = vmatprep.subr.bf16.mxu1 %v4355_v44 }
 0x3f6   :  { %4064 = vmatpush3.bf16.msra.mxu0 %v4356_v45 }
 0x3f7   :  { %4086 = vmatpush3.bf16.msra.mxu1 %v4357_v46  ;;  %4065 = vmatprep.subr.bf16.mxu0 %v4358_v47  ;;  %v4380_v47 = vld [vmem:[#allocation12 + $0x100] sm:$0xff]  }
 0x3f8   :  { %4087 = vmatprep.subr.bf16.mxu1 %v4359_v50  ;;  %v4381_v50 = vld [vmem:[#allocation12 + $0x180] sm:$0xff]  }
 0x3fa   :  { %4066 = vmatpush3.bf16.msra.mxu0 %v4360_v52  ;;  %v4382_v52 = vld [vmem:[#allocation12 + $0x148] sm:$0xff]  }
 0x3fb   :  { %4088 = vmatpush3.bf16.msra.mxu1 %v4361_v56  ;;  %4067 = vmatprep.subr.bf16.mxu0 %v4362_v55  ;;  %v4383_v56 = vld [vmem:[#allocation12 + $0x1c8] sm:$0xff]  }
 0x3fc   :  { %4089 = vmatprep.subr.bf16.mxu1 %v4363_v53  ;;  %v4384_v55 = vld [vmem:[#allocation12 + $0x108] sm:$0xff]  }
 0x3fd   :  { %v4385_v53 = vld [vmem:[#allocation12 + $0x188] sm:$0xff]  }
 0x3fe   :  { %4068 = vmatpush3.bf16.msra.mxu0 %v4364_v54  ;;  %v4386_v54 = vld [vmem:[#allocation12 + $0x150] sm:$0xff]  }
 0x3ff   :  { %4090 = vmatpush3.bf16.msra.mxu1 %v4365_v57  ;;  %4069 = vmatprep.subr.bf16.mxu0 %v4366_v58  ;;  %v4387_v57 = vld [vmem:[#allocation12 + $0x1d0] sm:$0xff]  }
 0x400   :  { %4091 = vmatprep.subr.bf16.mxu1 %v4367_v59  ;;  %v4388_v58 = vld [vmem:[#allocation12 + $0x110] sm:$0xff]  }
 0x401   :  { %v4389_v59 = vld [vmem:[#allocation12 + $0x190] sm:$0xff]  }
 0x402   :  { %4070 = vmatpush3.bf16.msra.mxu0 %v4368_v60  ;;  %v4390_v60 = vld [vmem:[#allocation12 + $0x158] sm:$0xff]  }
 0x403   :  { %4092 = vmatpush3.bf16.msra.mxu1 %v4369_v63  ;;  %4071 = vmatprep.subr.bf16.mxu0 %v4370_v61  ;;  %v4391_v63 = vld [vmem:[#allocation12 + $0x1d8] sm:$0xff]  }
 0x404   :  { %4093 = vmatprep.subr.bf16.mxu1 %v4371_v0  ;;  %v4392_v61 = vld [vmem:[#allocation12 + $0x118] sm:$0xff]  }
 0x405   :  { %v4393_v0 = vld [vmem:[#allocation12 + $0x198] sm:$0xff]  }
 0x406   :  { %4072 = vmatpush3.bf16.msra.mxu0 %v4372_v1  ;;  %v4394_v1 = vld [vmem:[#allocation12 + $0x160] sm:$0xff]  }
 0x407   :  { %4094 = vmatpush3.bf16.msra.mxu1 %v4373_v2  ;;  %4073 = vmatprep.subr.bf16.mxu0 %v4374_v3  ;;  %v4395_v2 = vld [vmem:[#allocation12 + $0x1e0] sm:$0xff]  }
 0x408   :  { %4095 = vmatprep.subr.bf16.mxu1 %v4375_v4  ;;  %v4396_v3 = vld [vmem:[#allocation12 + $0x120] sm:$0xff]  }
 0x409   :  { %v4397_v4 = vld [vmem:[#allocation12 + $0x1a0] sm:$0xff]  }
 0x40a   :  { %4074 = vmatpush3.bf16.msra.mxu0 %v4376_v5  ;;  %v4398_v5 = vld [vmem:[#allocation12 + $0x168] sm:$0xff]  }
 0x40b   :  { %4096 = vmatpush3.bf16.msra.mxu1 %v4377_v9  ;;  %4103 = vmatprep.subr.bf16.mxu0 %v4378_v13  ;;  %v4399_v9 = vld [vmem:[#allocation12 + $0x1e8] sm:$0xff]  }
 0x40c   :  { %4125 = vmatprep.subr.bf16.mxu1 %v4379_v15  ;;  %v4400_v13 = vld [vmem:[#allocation12 + $0x128] sm:$0xff]  }
 0x40d   :  { %v4401_v15 = vld [vmem:[#allocation12 + $0x1a8] sm:$0xff]  }
 0x440   :  { %v2593_v6 = vpop.f32.mrb[8].mxu0  ;;  %v2679_v7 = vpop.f32.mrb[8].mxu1 }
 0x441   :  { %v4167_v8 = vadd.f32 %v2593_v6, %v1199_v18  ;;  %v4171_v10 = vadd.f32 %v2679_v7, %v1207_v19  ;;  %v2595_v11 = vpop.f32.mrb[9].mxu0  ;;  %v2681_v12 = vpop.f32.mrb[9].mxu1  ;;  %v4406_v6 = vld [vmem:[#allocation12 + $0x178] sm:$0xff]  }
 0x442   :  { %v4168_v22 = vadd.f32 %v2595_v11, %v1203_v20  ;;  %v4172_v23 = vadd.f32 %v2681_v12, %v1211_v21  ;;  %v2597_v49 = vpop.f32.mrb[10].mxu0  ;;  %v2683_v24 = vpop.f32.mrb[10].mxu1  ;;  %v4407_v7 = vld [vmem:[#allocation12 + $0x1f8] sm:$0xff]   ;;  %v1214_v11 = vsub.s32 4, %v4757_v48  ;;  %v1222_v12 = vsub.s32 6, %v4757_v48 }
 0x443   :  { %vm2860_vm15 = vcmp.gt.f32.partialorder %v4167_v8, 0.0  ;;  %v2876_v25 = vmul.f32 0.2, %v4167_v8  ;;  %vm2862_vm0 = vcmp.gt.f32.partialorder %v4171_v10, 0.0  ;;  %v2878_v14 = vmul.f32 0.2, %v4171_v10 }
 0x444   :  { %vm2861_vm1 = vcmp.gt.f32.partialorder %v4168_v22, 0.0  ;;  %v2877_v51 = vmul.f32 0.2, %v4168_v22  ;;  %vm2863_vm2 = vcmp.gt.f32.partialorder %v4172_v23, 0.0  ;;  %v2879_v26 = vmul.f32 0.2, %v4172_v23 }
 0x445   :  { %v4169_v27 = vadd.f32 %v2597_v49, %v1199_v18  ;;  %v4173_v16 = vadd.f32 %v2683_v24, %v1207_v19  ;;  %v2599_v28 = vpop.f32.mrb[11].mxu0  ;;  %v2685_v29 = vpop.f32.mrb[11].mxu1  ;;  %v2892_v30 = vsel %vm2860_vm15, %v4167_v8, %v2876_v25  ;;  %v2894_v31 = vsel %vm2862_vm0, %v4171_v10, %v2878_v14  ;;  %v4402_v18 = vld [vmem:[#allocation12 + $0x170] sm:$0xff]   ;;  %v4408_v8 = vld [vmem:[#allocation12 + $0x138] sm:$0xff]  }
 0x446   :  { %v4170_v32 = vadd.f32 %v2599_v28, %v1203_v20  ;;  %v4174_v33 = vadd.f32 %v2685_v29, %v1211_v21  ;;  %v2893_v62 = vsel %vm2861_vm1, %v4168_v22, %v2877_v51  ;;  %v2895_v40 = vsel %vm2863_vm2, %v4172_v23, %v2879_v26  ;;  %v4403_v19 = vld [vmem:[#allocation12 + $0x1f0] sm:$0xff]   ;;  %v4409_v10 = vld [vmem:[#allocation12 + $0x1b8] sm:$0xff]  }
 0x447   :  { %vm2868_vm3 = vcmp.gt.f32.partialorder %v4169_v27, 0.0  ;;  %v2884_v34 = vmul.f32 0.2, %v4169_v27  ;;  %vm2870_vm4 = vcmp.gt.f32.partialorder %v4173_v16, 0.0  ;;  %v2886_v35 = vmul.f32 0.2, %v4173_v16 }
 0x448   :  { %vm2869_vm5 = vcmp.gt.f32.partialorder %v4170_v32, 0.0  ;;  %v2885_v36 = vmul.f32 0.2, %v4170_v32  ;;  %vm2871_vm6 = vcmp.gt.f32.partialorder %v4174_v33, 0.0  ;;  %v2887_v37 = vmul.f32 0.2, %v4174_v33 }
 0x449   :  { %v2900_v38 = vsel %vm2868_vm3, %v4169_v27, %v2884_v34  ;;  %v2902_v39 = vsel %vm2870_vm4, %v4173_v16, %v2886_v35  ;;  %v4404_v20 = vld [vmem:[#allocation12 + $0x130] sm:$0xff]   ;;  %v1218_v22 = vsub.s32 5, %v4757_v48  ;;  %v1226_v23 = vsub.s32 7, %v4757_v48 }
 0x44a   :  { %v2908_v41 = vpack.c.bf16 %v2900_v38, %v2892_v30  ;;  %v2910_v42 = vpack.c.bf16 %v2902_v39, %v2894_v31  ;;  %v2901_v43 = vsel %vm2869_vm5, %v4170_v32, %v2885_v36  ;;  %v2903_v44 = vsel %vm2871_vm6, %v4174_v33, %v2887_v37  ;;  %v4405_v21 = vld [vmem:[#allocation12 + $0x1b0] sm:$0xff]  }
 0x44b   :  { %v2909_v45 = vpack.c.bf16 %v2901_v43, %v2893_v62  ;;  %v2911_v46 = vpack.c.bf16 %v2903_v44, %v2895_v40  ;;  %v1215_v49 = vrot.slane %v4832_v17, %v1214_v11  ;;  %v1223_v24 = vrot.slane %v4832_v17, %v1222_v12 }
 0x44c   :  { %v1219_v25 = vrot.slane %v4832_v17, %v1218_v22  ;;  %v1227_v14 = vrot.slane %v4832_v17, %v1226_v23 }
 0x44d   :  { %3483 = vmatprep.mubr.bf16.mxu0 %v2909_v45  ;;  %3524 = vmatprep.mubr.bf16.mxu1 %v2911_v46 }
 0x44e   :  { %3484 = vmatmul.mubr.bf16.vlgmr.msra.gmra.mrb[16].mxu0 %v2908_v41  ;;  %3525 = vmatmul.mubr.bf16.vlgmr.msra.gmra.mrb[16].mxu1 %v2910_v42 }
 0x44f   :  { %4104 = vmatpush3.bf16.msra.mxu0 %v4380_v47  ;;  %4126 = vmatpush3.bf16.msra.mxu1 %v4381_v50 }
 0x450   :  { %4105 = vmatprep.subr.bf16.mxu0 %v4382_v52  ;;  %4127 = vmatprep.subr.bf16.mxu1 %v4383_v56 }
 0x453   :  { %4106 = vmatpush3.bf16.msra.mxu0 %v4384_v55  ;;  %4128 = vmatpush3.bf16.msra.mxu1 %v4385_v53 }
 0x454   :  { %4107 = vmatprep.subr.bf16.mxu0 %v4386_v54  ;;  %4129 = vmatprep.subr.bf16.mxu1 %v4387_v57 }
 0x457   :  { %4108 = vmatpush3.bf16.msra.mxu0 %v4388_v58  ;;  %4130 = vmatpush3.bf16.msra.mxu1 %v4389_v59 }
 0x458   :  { %4109 = vmatprep.subr.bf16.mxu0 %v4390_v60  ;;  %4131 = vmatprep.subr.bf16.mxu1 %v4391_v63 }
 0x45b   :  { %4110 = vmatpush3.bf16.msra.mxu0 %v4392_v61  ;;  %4132 = vmatpush3.bf16.msra.mxu1 %v4393_v0  ;;  %v3985_v61 = vld [vmem:[%s4885_s10] ss:$0 sm:$0xff]  ;;  %s4595_s10 = smov [#allocation14]  }
 0x45c   :  { %4111 = vmatprep.subr.bf16.mxu0 %v4394_v1  ;;  %4133 = vmatprep.subr.bf16.mxu1 %v4395_v2  ;;  %s3624_s18 = sshll.u32 %s4595_s10, 4  ;;  %s3625_s18 = int_to_ptr.vmem [resolvable:$true] %s3624_s18 }
 0x45d   :  { %s4546_s3 = scalar_lea.vmem %s3625_s18, 256  ;;  %p4551_p7 = scmp.lt.s32.totalorder %s3625_s18, %s3625_s18 }
 0x45e   :  { %p4547_p6 = scmp.ne.s32.totalorder %s3625_s18, %s4546_s3  ;;  %p4552_p8 = scmp.lt.s32.totalorder %s4546_s3, %s4546_s3 }
 0x45f   :  { %4112 = vmatpush3.bf16.msra.mxu0 %v4396_v3  ;;  %4134 = vmatpush3.bf16.msra.mxu1 %v4397_v4 }
 0x460   :  { %4113 = vmatprep.subr.bf16.mxu0 %v4398_v5  ;;  %4135 = vmatprep.subr.bf16.mxu1 %v4399_v9  ;;  %p4553_p9 = por %p4552_p8, %p4551_p7 }
 0x462   :  { %p4554_p10 = pnand %p4553_p9, %p4547_p6 }
 0x463   :  { %4114 = vmatpush3.bf16.msra.mxu0 %v4400_v13  ;;  %4136 = vmatpush3.bf16.msra.mxu1 %v4401_v15 }
 0x464   :  { %4115 = vmatprep.subr.bf16.mxu0 %v4402_v18  ;;  %4137 = vmatprep.subr.bf16.mxu1 %v4403_v19 }
 0x467   :  { %4116 = vmatpush3.bf16.msra.mxu0 %v4404_v20  ;;  %4138 = vmatpush3.bf16.msra.mxu1 %v4405_v21 }
 0x468   :  { %4117 = vmatprep.subr.bf16.mxu0 %v4406_v6  ;;  %4139 = vmatprep.subr.bf16.mxu1 %v4407_v7 }
 0x46b   :  { %4118 = vmatpush3.bf16.msra.mxu0 %v4408_v8  ;;  %4140 = vmatpush3.bf16.msra.mxu1 %v4409_v10 }
 0x4c0   :  { %v2765_v51 = vpop.f32.mrb[12].mxu0 }
 0x4c1   :  { %v4175_v26 = vadd.f32 %v2765_v51, %v1215_v49  ;;  %v2851_v27 = vpop.f32.mrb[12].mxu1  ;;  %v2767_v16 = vpop.f32.mrb[13].mxu0 }
 0x4c2   :  { %v4179_v28 = vadd.f32 %v2851_v27, %v1223_v24  ;;  %v4176_v29 = vadd.f32 %v2767_v16, %v1219_v25  ;;  %v2853_v30 = vpop.f32.mrb[13].mxu1  ;;  %v2769_v31 = vpop.f32.mrb[14].mxu0 }
 0x4c3   :  { %v2880_v32 = vmul.f32 0.2, %v4175_v26  ;;  %v4180_v33 = vadd.f32 %v2853_v30, %v1227_v14  ;;  %v4177_v34 = vadd.f32 %v2769_v31, %v1215_v49  ;;  %v2855_v48 = vpop.f32.mrb[14].mxu1  ;;  %v2771_v35 = vpop.f32.mrb[15].mxu0  ;;  %vm2864_vm7 = vcmp.gt.f32.partialorder %v4175_v26, 0.0 }
 0x4c4   :  { %vm2866_vm8 = vcmp.gt.f32.partialorder %v4179_v28, 0.0  ;;  %v2882_v36 = vmul.f32 0.2, %v4179_v28  ;;  %vm2865_vm9 = vcmp.gt.f32.partialorder %v4176_v29, 0.0  ;;  %v2857_v37 = vpop.f32.mrb[15].mxu1  ;;  %v4181_v39 = vadd.f32 %v2855_v48, %v1223_v24 }
 0x4c5   :  { %vm2872_vm10 = vcmp.gt.f32.partialorder %v4177_v34, 0.0  ;;  %v2881_v17 = vmul.f32 0.2, %v4176_v29  ;;  %v2888_v38 = vmul.f32 0.2, %v4177_v34  ;;  %v4178_v62 = vadd.f32 %v2771_v35, %v1219_v25 }
 0x4c6   :  { %v2896_v40 = vsel %vm2864_vm7, %v4175_v26, %v2880_v32  ;;  %vm2867_vm11 = vcmp.gt.f32.partialorder %v4180_v33, 0.0  ;;  %v2883_v41 = vmul.f32 0.2, %v4180_v33  ;;  %v4182_v42 = vadd.f32 %v2857_v37, %v1227_v14 }
 0x4c7   :  { %v2904_v43 = vsel %vm2872_vm10, %v4177_v34, %v2888_v38  ;;  %vm2874_vm12 = vcmp.gt.f32.partialorder %v4181_v39, 0.0  ;;  %v2890_v44 = vmul.f32 0.2, %v4181_v39  ;;  %vm2873_vm13 = vcmp.gt.f32.partialorder %v4178_v62, 0.0 }
 0x4c8   :  { %v2912_v45 = vpack.c.bf16 %v2904_v43, %v2896_v40  ;;  %v2889_v46 = vmul.f32 0.2, %v4178_v62  ;;  %vm2875_vm14 = vcmp.gt.f32.partialorder %v4182_v42, 0.0  ;;  %v2891_v47 = vmul.f32 0.2, %v4182_v42 }
 0x4c9   :  { %v2898_v50 = vsel %vm2866_vm8, %v4179_v28, %v2882_v36  ;;  %v2906_v52 = vsel %vm2874_vm12, %v4181_v39, %v2890_v44  ;;  %v2897_v56 = vsel %vm2865_vm9, %v4176_v29, %v2881_v17  ;;  %v2899_v54 = vsel %vm2867_vm11, %v4180_v33, %v2883_v41 }
 0x4ca   :  { %v2914_v55 = vpack.c.bf16 %v2906_v52, %v2898_v50  ;;  %v2905_v53 = vsel %vm2873_vm13, %v4178_v62, %v2889_v46  ;;  %v2907_v57 = vsel %vm2875_vm14, %v4182_v42, %v2891_v47 }
 0x4cb   :  { %v2913_v58 = vpack.c.bf16 %v2905_v53, %v2897_v56  ;;  %v2915_v59 = vpack.c.bf16 %v2907_v57, %v2899_v54 }
 0x4cd   :  { %3565 = vmatprep.mubr.bf16.mxu0 %v2913_v58  ;;  %3606 = vmatprep.mubr.bf16.mxu1 %v2915_v59 }
 0x4ce   :  { %3566 = vmatmul.mubr.bf16.vlgmr.msra.gmra.mrb[20].mxu0 %v2912_v45  ;;  %3607 = vmatmul.mubr.bf16.vlgmr.msra.gmra.mrb[20].mxu1 %v2914_v55 }
 0x521   :  { %v4075_v60 = vpop.f32.mrb[16].mxu0  ;;  %v4097_v63 = vpop.f32.mrb[16].mxu1 }
 0x522   :  { %v4076_v0 = vpop.f32.mrb[17].mxu0  ;;  %v4098_v1 = vpop.f32.mrb[17].mxu1 }
 0x523   :  { %v4077_v2 = vadd.f32 %v4076_v0, %v4075_v60  ;;  %v4099_v3 = vadd.f32 %v4098_v1, %v4097_v63  ;;  %v4078_v4 = vpop.f32.mrb[18].mxu0  ;;  %v4100_v5 = vpop.f32.mrb[18].mxu1 }
 0x524   :  { %v4079_v9 = vpop.f32.mrb[19].mxu0  ;;  %v4101_v13 = vpop.f32.mrb[19].mxu1 }
 0x525   :  { %v3486_v15 = vadd.f32 %v4077_v2, %v3985_v61  ;;  %v4080_v18 = vadd.f32 %v4079_v9, %v4078_v4  ;;  %v4102_v19 = vadd.f32 %v4101_v13, %v4100_v5 }
 0x527   :  { %v3527_v20 = vadd.f32 %v4099_v3, %v3486_v15  ;;  %v3489_v21 = vadd.f32 %v4080_v18, %v3985_v61 }
 0x529   :  { %v3530_v6 = vadd.f32 %v4102_v19, %v3489_v21 }
 0x5a1   :  { %v4119_v7 = vpop.f32.mrb[20].mxu0  ;;  %v4141_v8 = vpop.f32.mrb[20].mxu1 }
 0x5a2   :  { %v4120_v10 = vpop.f32.mrb[21].mxu0  ;;  %v4142_v11 = vpop.f32.mrb[21].mxu1 }
 0x5a3   :  { %v4121_v12 = vadd.f32 %v4120_v10, %v4119_v7  ;;  %v4143_v22 = vadd.f32 %v4142_v11, %v4141_v8  ;;  %v4122_v23 = vpop.f32.mrb[22].mxu0  ;;  %v4144_v49 = vpop.f32.mrb[22].mxu1 }
 0x5a4   :  { %v4123_v24 = vpop.f32.mrb[23].mxu0  ;;  %v4145_v25 = vpop.f32.mrb[23].mxu1 }
 0x5a5   :  { %v3568_v14 = vadd.f32 %v4121_v12, %v3527_v20  ;;  %v4124_v51 = vadd.f32 %v4123_v24, %v4122_v23  ;;  %v4146_v26 = vadd.f32 %v4145_v25, %v4144_v49 }
 0x5a7   :  { %v3609_v27 = vadd.f32 %v4143_v22, %v3568_v14  ;;  %v3571_v16 = vadd.f32 %v4124_v51, %v3530_v6 }
 0x5a9   :  { %4410 = vtanh.f32 %v3609_v27  ;;  %v3612_v28 = vadd.f32 %v4146_v26, %v3571_v16 }
 0x5ab   :  { %4412 = vtanh.f32 %v3612_v28 }
 0x5b3   :  { %v4411_v29 = vpop.eup %4410 }
 0x5b4   :  { %3617 = vst [vmem:[#allocation14] sm:$0xff] %v4411_v29 }
 0x5b5   :  { %v4413_v30 = vpop.eup %4412 }
 0x5b6   :  { %3618 = vst [vmem:[#allocation14 + $0x8] sm:$0xff] %v4413_v30 }
 0x5b7   :  { %4557 = shalt.err (!%p4554_p10)
}
 0x5b8   :  { %s4558_s25 = scalar_lea.hbm %s4886_s11, 256 }
 0x5b9   :  { %p4559_p11 = scmp.ne.s32.totalorder %s4886_s11, %s4558_s25  ;;  %p4562_p12 = scmp.lt.u32.totalorder %s4558_s25, %s4886_s11 }
 0x5bb   :  { %p4564_p13 = pnand %p4562_p12, %p4559_p11 }
 0x5bd   :  { %4567 = shalt.err (!%p4564_p13)
}
 0x5be   :  { %3630 = dma.vmem_to_hbm [thread:$0]  %s3625_s18, 256, %s4886_s11, [#allocation5], %s4586_s0, %s4586_s0, %s4587_s27  }
 0x5bf   :  { %4576 = dma.done.wait [#allocation5], 256  }
 0x5c0   :  { %4577 = vsyncadd [#allocation5], 4294967040 }
 0x5c1   :  { %3634 = vsyncpa [#allocation4], 1 }
 0x5c2   :  { %3635 = vsyncpa [#allocation7], 1 }
 0x5c3   :  { %3636 = vsyncpa [#allocation10], 1 }
 0x5c4   :  { %3637 = vsyncpa [#allocation13], 1 }
 0x5c5   :  { %3638 = vsyncpa [#allocation5], 1 }

</bundles_post_ra>
